<compile_context>
chip_gen: v5e
topology: v5e:2x2
jax: 0.10.0
libtpu: 0.0.40
codegen_flags: <defaults>
</compile_context>

<pallas_src>
import jax
import jax.numpy as jnp
from jax.experimental import pallas as pl
from jax.experimental.pallas import tpu as pltpu

B = 16         # graphs in the batch
N = 16         # nodes per graph
F = 32         # feature dim
R = 3          # edge types (relations)
T = 2          # node types
NB = 128       # nodes per aggregation sub-block (one 128-lane tile of nodes)
EPS = 1e-5
NEG_SLOPE = 0.01


def _make_kernel(sb):
    """Kernel over one tile of sb*128 nodes (sb independent diagonal blocks)."""

    def kernel(x_ref, adj_ref, et_ref, ntype_ref, tab_ref,
               wconv_ref, wmlp_ref, out_ref):
        # x_ref     : [F, sb*NB]      transposed node features (lane-dense)
        # adj_ref   : [sb, NB, NB]    int8 block-diag adjacency, TRANSPOSED (src,dst)
        # et_ref    : [sb, NB, NB]    int8 edge types (same layout)
        # ntype_ref : [8, sb*NB]      f32 node-type id (row 0 valid, sublane-aligned)
        # tab_ref   : [5, F, T]       cn_g, cn_b, mn_g, mn_b, mlp_bias tables
        # wconv_ref : [R*F, F]        stacked W_r^T
        # wmlp_ref  : [T*F, F]        stacked Wmlp_t^T
        # out_ref   : [F, sb*NB]
        w_conv = wconv_ref[...]
        w_mlp = wmlp_ref[...]
        # [F, 1] column per (param, type); hoisted out of the sub-block loop.
        tab = [[tab_ref[p, :, t:t + 1] for t in range(T)] for p in range(5)]

        def act(v):                      # LeakyReLU(0.01)
            return jnp.where(v >= 0.0, v, NEG_SLOPE * v)

        def layernorm(v):                # per-node norm over F (sublane axis)
            mean = jnp.mean(v, axis=0, keepdims=True)
            var = jnp.mean((v - mean) ** 2, axis=0, keepdims=True)
            return (v - mean) * jax.lax.rsqrt(var + EPS)

        for s in range(sb):              # independent 128-node diagonal blocks
            lo, hi = s * NB, (s + 1) * NB
            x = x_ref[:, lo:hi]                                   # [F, NB]
            ntype = ntype_ref[0:1, lo:hi]                         # [1, NB]
            onehot = [(ntype == float(t)).astype(jnp.float32) for t in range(T)]

            def per_node(p):             # per-node param [F, NB] from table p
                acc = tab[p][0] * onehot[0]
                for t in range(1, T):
                    acc = acc + tab[p][t] * onehot[t]
                return acc

            # ---- conv branch: Norm -> Act -> (Dropout p=0 == id) -> Conv -> +res
            y = act(layernorm(x) * per_node(0) + per_node(1))
            # All relation message transforms in ONE matmul: [R*F,F]@[F,NB]
            msgs = jnp.dot(w_conv, y, preferred_element_type=jnp.float32)
            # Per-relation mask rebuilt in-kernel (VPU slack; 6x less DMA).
            adj_f = adj_ref[s].astype(jnp.float32)                # A^T block
            et_f = et_ref[s].astype(jnp.float32)
            conv = None
            for r in range(R):
                a_r = jnp.where(et_f == float(r), adj_f, 0.0)
                part = jnp.dot(msgs[r * F:(r + 1) * F, :], a_r,
                               preferred_element_type=jnp.float32)
                conv = part if conv is None else conv + part
            x = x + conv

            # ---- mlp branch: Norm -> Act -> (Dropout p=0 == id) -> MLP -> +res
            y = act(layernorm(x) * per_node(2) + per_node(3))
            # All per-type linears in ONE matmul: [T*F,F]@[F,NB]
            h = jnp.dot(w_mlp, y, preferred_element_type=jnp.float32)
            sel = h[0:F, :] * onehot[0]
            for t in range(1, T):
                sel = sel + h[t * F:(t + 1) * F, :] * onehot[t]
            x = x + sel + per_node(4)

            out_ref[:, lo:hi] = x.astype(out_ref.dtype)

    return kernel


def _single_tensorcore_chip() -> bool:
    # v5e / v6e expose one TensorCore per chip; v4/v5p (megacore) and v7x
    # (2 TCs) want >= 2 "parallel" grid steps instead.
    try:
        kind = jax.devices()[0].device_kind.lower()
    except Exception:
        return False
    return any(tag in kind for tag in ("v5e", "v5 lite", "v6e", "v6 lite"))


def _pick_m_tile(total_nodes: int) -> int:
    if _single_tensorcore_chip():
        return min(total_nodes, 2 * NB)   # one big step: kill per-step overhead
    return min(total_nodes, NB)           # >= 2 steps feed both TCs on v7x


def hetero_residual_block(x_t, adj_t, etype_t, ntype_sub, tables,
                          wconv_t, wmlp_t):
    """x_t: [F, B*N]; adj_t/etype_t: [nb, NB, NB] int8; ntype_sub: [8, B*N]."""
    m_total = x_t.shape[1]
    assert m_total % NB == 0
    m_tile = _pick_m_tile(m_total)
    sb = m_tile // NB
    num_tiles = m_total // m_tile

    flops = 2 * m_total * F * (R * F + T * F + R * NB)
    bytes_accessed = (2 * F * m_total * 4          # x in + out (f32)
                      + 2 * m_total * NB           # adj + edge_type (int8)
                      + 8 * m_total * 4            # node-type rows
                      + (tables.size + wconv_t.size + wmlp_t.size) * 4)

    return pl.pallas_call(
        _make_kernel(sb),
        out_shape=jax.ShapeDtypeStruct((F, m_total), jnp.float32),
        grid=(num_tiles,),
        in_specs=[
            pl.BlockSpec((F, m_tile), lambda i: (0, i)),
            pl.BlockSpec((sb, NB, NB), lambda i: (i, 0, 0)),
            pl.BlockSpec((sb, NB, NB), lambda i: (i, 0, 0)),
            pl.BlockSpec((8, m_tile), lambda i: (0, i)),
            pl.BlockSpec((5, F, T), lambda i: (0, 0, 0)),
            pl.BlockSpec((R * F, F), lambda i: (0, 0)),
            pl.BlockSpec((T * F, F), lambda i: (0, 0)),
        ],
        out_specs=pl.BlockSpec((F, m_tile), lambda i: (0, i)),
        input_output_aliases={0: 0},   # out = x + updates; x_t is dead afterwards
        cost_estimate=pl.CostEstimate(flops=flops, transcendentals=2 * m_total,
                                      bytes_accessed=bytes_accessed),
        compiler_params=pltpu.CompilerParams(
            dimension_semantics=("parallel",),
            vmem_limit_bytes=32 * 1024 * 1024),
    )(x_t, adj_t, etype_t, ntype_sub, tables, wconv_t, wmlp_t)


def prepare_inputs(x, adj, edge_type, node_type,
                   cn_g, cn_b, mn_g, mn_b, w_conv, w_mlp, b_mlp):
    """Plain-JAX glue: compact int8 adjacency blocks, tables, lane-dense relayout."""
    total = B * N
    assert total % NB == 0 and NB % N == 0
    nb = total // NB                      # number of 128-node aggregation blocks
    gpb = NB // N                         # graphs per 128-node block

    # Explicit clamp so affine/bias tables and the MLP-weight selection treat
    # out-of-range node types identically.
    node_type = jnp.clip(node_type, 0, T - 1)

    # Compact int8 block-diagonal adjacency / edge-type, one [NB, NB] block per
    # 128 nodes, TRANSPOSED to [src, dst] because the kernel multiplies the
    # messages from the right: conv^T = sum_r (W_r^T y^T) @ A_r^T.
    eye = jnp.eye(gpb, dtype=jnp.int8)

    def block_diag_t(m):                  # [B, N, N] int8 -> [nb, NB, NB]
        m = m.reshape(nb, gpb, N, N)
        bd = m[:, :, None, :, :] * eye[None, :, :, None, None]   # [nb,g,h,N,N]
        bd = bd.transpose(0, 1, 3, 2, 4).reshape(nb, NB, NB)     # block-diagonal
        return jnp.swapaxes(bd, -1, -2)                          # A^T

    adj_t = block_diag_t(adj.astype(jnp.int8))
    etype_t = block_diag_t(edge_type.astype(jnp.int8))

    # Node type as an 8-sublane-aligned f32 row; per-type parameter tables
    # packed into one tiny grid-invariant operand [5, F, T].
    ntype_sub = jnp.broadcast_to(
        node_type.reshape(1, total).astype(jnp.float32), (8, total))
    tables = jnp.stack([cn_g, cn_b, mn_g, mn_b, b_mlp[:, 0, :]], axis=0)   # [5,T,F]
    tables = jnp.swapaxes(tables, -1, -2)                                   # [5,F,T]

    # Features transposed to lane-dense [F, total]; weights stacked & transposed.
    x_t = x.reshape(total, F).T
    wconv_t = jnp.transpose(w_conv, (0, 2, 1)).reshape(R * F, F)
    wmlp_t = jnp.transpose(w_mlp, (0, 2, 1)).reshape(T * F, F)
    return x_t, adj_t, etype_t, ntype_sub, tables, wconv_t, wmlp_t


def reference_forward(x, adj, edge_type, node_type,
                      cn_g, cn_b, mn_g, mn_b, w_conv, w_mlp, b_mlp):
    hi = jax.lax.Precision.HIGHEST
    onehot = jax.nn.one_hot(node_type, T, dtype=jnp.float32)
    adj_r = adj[:, None, :, :] * (
        edge_type[:, None, :, :] == jnp.arange(R)[None, :, None, None])

    def act(v):
        return jnp.where(v >= 0.0, v, NEG_SLOPE * v)

    def hln(v, g, b):
        mean = v.mean(-1, keepdims=True)
        var = ((v - mean) ** 2).mean(-1, keepdims=True)
        vhat = (v - mean) * jax.lax.rsqrt(var + EPS)
        return vhat * g[node_type] + b[node_type]

    y = act(hln(x, cn_g, cn_b))
    conv = jnp.einsum("brij,bjf,rfg->big", adj_r, y, w_conv, precision=hi)
    x = x + conv
    y = act(hln(x, mn_g, mn_b))
    mlp = jnp.einsum("bnt,bnf,tfg->bng", onehot, y, w_mlp, precision=hi)
    mlp = mlp + b_mlp[node_type, 0, :]
    return x + mlp


if __name__ == "__main__":
    key = jax.random.PRNGKey(0)
    keys = jax.random.split(key, 12)

    # Batch of B independent graphs.
    x = jax.random.normal(keys[0], (B, N, F), jnp.float32)
    node_type = jax.random.randint(keys[1], (B, N), 0, T)
    adj = (jax.random.uniform(keys[2], (B, N, N)) < 0.3).astype(jnp.float32)
    edge_type = jax.random.randint(keys[3], (B, N, N), 0, R)

    # Shared parameters (deterministic init).
    cn_g = 1.0 + 0.1 * jax.random.normal(keys[4], (T, F), jnp.float32)
    cn_b = 0.1 * jax.random.normal(keys[5], (T, F), jnp.float32)
    mn_g = 1.0 + 0.1 * jax.random.normal(keys[6], (T, F), jnp.float32)
    mn_b = 0.1 * jax.random.normal(keys[7], (T, F), jnp.float32)
    w_conv = jax.random.normal(keys[8], (R, F, F), jnp.float32) / jnp.sqrt(F)
    w_mlp = jax.random.normal(keys[9], (T, F, F), jnp.float32) / jnp.sqrt(F)
    b_mlp = 0.1 * jax.random.normal(keys[10], (T, 1, F), jnp.float32)

    @jax.jit
    def run(x, adj, edge_type, node_type,
            cn_g, cn_b, mn_g, mn_b, w_conv, w_mlp, b_mlp):
        inputs = prepare_inputs(x, adj, edge_type, node_type,
                                cn_g, cn_b, mn_g, mn_b, w_conv, w_mlp, b_mlp)
        out_t = hetero_residual_block(*inputs)
        return out_t.T.reshape(B, N, F)

    out = jax.block_until_ready(
        run(x, adj, edge_type, node_type,
            cn_g, cn_b, mn_g, mn_b, w_conv, w_mlp, b_mlp))

    ref = reference_forward(x, adj, edge_type, node_type,
                            cn_g, cn_b, mn_g, mn_b, w_conv, w_mlp, b_mlp)
    assert out.shape == (B, N, F)
    max_err = float(jnp.max(jnp.abs(out - ref)))
    assert jnp.allclose(out, ref, atol=1e-3, rtol=1e-3), max_err
    print("KERNEL_OK")
</pallas_src>

<mosaic_0001>
module attributes {stable_mosaic.version = 11 : i64} {
  func.func @kernel(%arg0: i32, %arg1: memref<32x128xf32, #tpu.memory_space<vmem>>, %arg2: memref<1x128x128xi8, #tpu.memory_space<vmem>>, %arg3: memref<1x128x128xi8, #tpu.memory_space<vmem>>, %arg4: memref<8x128xf32, #tpu.memory_space<vmem>>, %arg5: memref<5x32x2xf32, #tpu.memory_space<vmem>>, %arg6: memref<96x32xf32, #tpu.memory_space<vmem>>, %arg7: memref<64x32xf32, #tpu.memory_space<vmem>>, %arg8: memref<32x128xf32, #tpu.memory_space<vmem>>) attributes {dimension_semantics = [#tpu.dimension_semantics<parallel>], iteration_bounds = array<i64: 2>, scalar_prefetch = 0 : i64, scratch_operands = 0 : i64, tpu.core_type = #tpu.core_type<tc>, window_params = [{transform_indices = @transform_0, window_bounds = array<i64: 32, 128>}, {transform_indices = @transform_1, window_bounds = array<i64: 1, 128, 128>}, {transform_indices = @transform_2, window_bounds = array<i64: 1, 128, 128>}, {transform_indices = @transform_3, window_bounds = array<i64: 8, 128>}, {pipeline_mode = #tpu.pipeline_mode<synchronous>, transform_indices = @transform_4, window_bounds = array<i64: 5, 32, 2>}, {pipeline_mode = #tpu.pipeline_mode<synchronous>, transform_indices = @transform_5, window_bounds = array<i64: 96, 32>}, {pipeline_mode = #tpu.pipeline_mode<synchronous>, transform_indices = @transform_6, window_bounds = array<i64: 64, 32>}, {transform_indices = @transform_7, window_bounds = array<i64: 32, 128>}]} {
    %c0 = arith.constant 0 : index
    %c0_0 = arith.constant 0 : index
    %0 = vector.load %arg6[%c0, %c0_0] : memref<96x32xf32, #tpu.memory_space<vmem>>, vector<96x32xf32>
    %c0_1 = arith.constant 0 : index
    %c0_2 = arith.constant 0 : index
    %1 = vector.load %arg7[%c0_1, %c0_2] : memref<64x32xf32, #tpu.memory_space<vmem>>, vector<64x32xf32>
    %c0_3 = arith.constant 0 : index
    %c0_4 = arith.constant 0 : index
    %c0_5 = arith.constant 0 : index
    %2 = vector.load %arg5[%c0_3, %c0_4, %c0_5] : memref<5x32x2xf32, #tpu.memory_space<vmem>>, vector<1x32x1xf32>
    %3 = vector.shape_cast %2 : vector<1x32x1xf32> to vector<32x1xf32>
    %c0_6 = arith.constant 0 : index
    %c0_7 = arith.constant 0 : index
    %c1 = arith.constant 1 : index
    %4 = vector.load %arg5[%c0_6, %c0_7, %c1] : memref<5x32x2xf32, #tpu.memory_space<vmem>>, vector<1x32x1xf32>
    %5 = vector.shape_cast %4 : vector<1x32x1xf32> to vector<32x1xf32>
    %c1_8 = arith.constant 1 : index
    %c0_9 = arith.constant 0 : index
    %c0_10 = arith.constant 0 : index
    %6 = vector.load %arg5[%c1_8, %c0_9, %c0_10] : memref<5x32x2xf32, #tpu.memory_space<vmem>>, vector<1x32x1xf32>
    %7 = vector.shape_cast %6 : vector<1x32x1xf32> to vector<32x1xf32>
    %c1_11 = arith.constant 1 : index
    %c0_12 = arith.constant 0 : index
    %c1_13 = arith.constant 1 : index
    %8 = vector.load %arg5[%c1_11, %c0_12, %c1_13] : memref<5x32x2xf32, #tpu.memory_space<vmem>>, vector<1x32x1xf32>
    %9 = vector.shape_cast %8 : vector<1x32x1xf32> to vector<32x1xf32>
    %c2 = arith.constant 2 : index
    %c0_14 = arith.constant 0 : index
    %c0_15 = arith.constant 0 : index
    %10 = vector.load %arg5[%c2, %c0_14, %c0_15] : memref<5x32x2xf32, #tpu.memory_space<vmem>>, vector<1x32x1xf32>
    %11 = vector.shape_cast %10 : vector<1x32x1xf32> to vector<32x1xf32>
    %c2_16 = arith.constant 2 : index
    %c0_17 = arith.constant 0 : index
    %c1_18 = arith.constant 1 : index
    %12 = vector.load %arg5[%c2_16, %c0_17, %c1_18] : memref<5x32x2xf32, #tpu.memory_space<vmem>>, vector<1x32x1xf32>
    %13 = vector.shape_cast %12 : vector<1x32x1xf32> to vector<32x1xf32>
    %c3 = arith.constant 3 : index
    %c0_19 = arith.constant 0 : index
    %c0_20 = arith.constant 0 : index
    %14 = vector.load %arg5[%c3, %c0_19, %c0_20] : memref<5x32x2xf32, #tpu.memory_space<vmem>>, vector<1x32x1xf32>
    %15 = vector.shape_cast %14 : vector<1x32x1xf32> to vector<32x1xf32>
    %c3_21 = arith.constant 3 : index
    %c0_22 = arith.constant 0 : index
    %c1_23 = arith.constant 1 : index
    %16 = vector.load %arg5[%c3_21, %c0_22, %c1_23] : memref<5x32x2xf32, #tpu.memory_space<vmem>>, vector<1x32x1xf32>
    %17 = vector.shape_cast %16 : vector<1x32x1xf32> to vector<32x1xf32>
    %c4 = arith.constant 4 : index
    %c0_24 = arith.constant 0 : index
    %c0_25 = arith.constant 0 : index
    %18 = vector.load %arg5[%c4, %c0_24, %c0_25] : memref<5x32x2xf32, #tpu.memory_space<vmem>>, vector<1x32x1xf32>
    %19 = vector.shape_cast %18 : vector<1x32x1xf32> to vector<32x1xf32>
    %c4_26 = arith.constant 4 : index
    %c0_27 = arith.constant 0 : index
    %c1_28 = arith.constant 1 : index
    %20 = vector.load %arg5[%c4_26, %c0_27, %c1_28] : memref<5x32x2xf32, #tpu.memory_space<vmem>>, vector<1x32x1xf32>
    %21 = vector.shape_cast %20 : vector<1x32x1xf32> to vector<32x1xf32>
    %c0_29 = arith.constant 0 : index
    %c0_30 = arith.constant 0 : index
    %22 = vector.load %arg1[%c0_29, %c0_30] : memref<32x128xf32, #tpu.memory_space<vmem>>, vector<32x128xf32>
    %c0_31 = arith.constant 0 : index
    %c0_32 = arith.constant 0 : index
    %23 = vector.load %arg4[%c0_31, %c0_32] : memref<8x128xf32, #tpu.memory_space<vmem>>, vector<1x128xf32>
    %cst = arith.constant 0.000000e+00 : f32
    %24 = vector.broadcast %cst : f32 to vector<1x128xf32>
    %25 = arith.cmpf oeq, %23, %24 : vector<1x128xf32>
    %26 = arith.extui %25 : vector<1x128xi1> to vector<1x128xi32>
    %27 = arith.sitofp %26 : vector<1x128xi32> to vector<1x128xf32>
    %cst_33 = arith.constant 1.000000e+00 : f32
    %28 = vector.broadcast %cst_33 : f32 to vector<1x128xf32>
    %29 = arith.cmpf oeq, %23, %28 : vector<1x128xf32>
    %30 = arith.extui %29 : vector<1x128xi1> to vector<1x128xi32>
    %31 = arith.sitofp %30 : vector<1x128xi32> to vector<1x128xf32>
    %cst_34 = arith.constant dense<0.000000e+00> : vector<128xf32>
    %32 = vector.multi_reduction <add>, %22, %cst_34 [0] : vector<32x128xf32> to vector<128xf32>
    %33 = vector.shape_cast %32 : vector<128xf32> to vector<1x128xf32>
    %cst_35 = arith.constant 3.200000e+01 : f32
    %34 = vector.broadcast %cst_35 : f32 to vector<1x128xf32>
    %35 = arith.divf %33, %34 : vector<1x128xf32>
    %36 = vector.broadcast %35 : vector<1x128xf32> to vector<32x128xf32>
    %37 = arith.subf %22, %36 : vector<32x128xf32>
    %38 = arith.mulf %37, %37 : vector<32x128xf32>
    %cst_36 = arith.constant dense<0.000000e+00> : vector<128xf32>
    %39 = vector.multi_reduction <add>, %38, %cst_36 [0] : vector<32x128xf32> to vector<128xf32>
    %40 = vector.shape_cast %39 : vector<128xf32> to vector<1x128xf32>
    %cst_37 = arith.constant 3.200000e+01 : f32
    %41 = vector.broadcast %cst_37 : f32 to vector<1x128xf32>
    %42 = arith.divf %40, %41 : vector<1x128xf32>
    %43 = vector.broadcast %35 : vector<1x128xf32> to vector<32x128xf32>
    %44 = arith.subf %22, %43 : vector<32x128xf32>
    %cst_38 = arith.constant 9.99999974E-6 : f32
    %45 = vector.broadcast %cst_38 : f32 to vector<1x128xf32>
    %46 = arith.addf %42, %45 : vector<1x128xf32>
    %47 = math.rsqrt %46 : vector<1x128xf32>
    %48 = vector.broadcast %47 : vector<1x128xf32> to vector<32x128xf32>
    %49 = arith.mulf %44, %48 : vector<32x128xf32>
    %50 = vector.broadcast %3 : vector<32x1xf32> to vector<32x128xf32>
    %51 = vector.broadcast %27 : vector<1x128xf32> to vector<32x128xf32>
    %52 = arith.mulf %50, %51 : vector<32x128xf32>
    %53 = vector.broadcast %5 : vector<32x1xf32> to vector<32x128xf32>
    %54 = vector.broadcast %31 : vector<1x128xf32> to vector<32x128xf32>
    %55 = arith.mulf %53, %54 : vector<32x128xf32>
    %56 = arith.addf %52, %55 : vector<32x128xf32>
    %57 = arith.mulf %49, %56 : vector<32x128xf32>
    %58 = vector.broadcast %7 : vector<32x1xf32> to vector<32x128xf32>
    %59 = vector.broadcast %27 : vector<1x128xf32> to vector<32x128xf32>
    %60 = arith.mulf %58, %59 : vector<32x128xf32>
    %61 = vector.broadcast %9 : vector<32x1xf32> to vector<32x128xf32>
    %62 = vector.broadcast %31 : vector<1x128xf32> to vector<32x128xf32>
    %63 = arith.mulf %61, %62 : vector<32x128xf32>
    %64 = arith.addf %60, %63 : vector<32x128xf32>
    %65 = arith.addf %57, %64 : vector<32x128xf32>
    %cst_39 = arith.constant 0.000000e+00 : f32
    %66 = vector.broadcast %cst_39 : f32 to vector<32x128xf32>
    %67 = arith.cmpf oge, %65, %66 : vector<32x128xf32>
    %cst_40 = arith.constant 0.00999999977 : f32
    %68 = vector.broadcast %cst_40 : f32 to vector<32x128xf32>
    %69 = arith.mulf %68, %65 : vector<32x128xf32>
    %70 = arith.select %67, %65, %69 : vector<32x128xi1>, vector<32x128xf32>
    %cst_41 = arith.constant dense<0.000000e+00> : vector<96x128xf32>
    %71 = tpu.matmul %0, %70, %cst_41 {dimension_numbers = #tpu.dot_dimension_numbers<[1], [0], [0], [1], [0, 0, 1, 1], [], []>} : vector<96x32xf32>, vector<32x128xf32>, vector<96x128xf32> -> vector<96x128xf32>
    %c0_42 = arith.constant 0 : index
    %c0_43 = arith.constant 0 : index
    %c0_44 = arith.constant 0 : index
    %72 = vector.load %arg2[%c0_42, %c0_43, %c0_44] : memref<1x128x128xi8, #tpu.memory_space<vmem>>, vector<1x128x128xi8>
    %73 = vector.shape_cast %72 : vector<1x128x128xi8> to vector<128x128xi8>
    %74 = arith.sitofp %73 : vector<128x128xi8> to vector<128x128xf32>
    %c0_45 = arith.constant 0 : index
    %c0_46 = arith.constant 0 : index
    %c0_47 = arith.constant 0 : index
    %75 = vector.load %arg3[%c0_45, %c0_46, %c0_47] : memref<1x128x128xi8, #tpu.memory_space<vmem>>, vector<1x128x128xi8>
    %76 = vector.shape_cast %75 : vector<1x128x128xi8> to vector<128x128xi8>
    %77 = arith.sitofp %76 : vector<128x128xi8> to vector<128x128xf32>
    %cst_48 = arith.constant 0.000000e+00 : f32
    %78 = vector.broadcast %cst_48 : f32 to vector<128x128xf32>
    %79 = arith.cmpf oeq, %77, %78 : vector<128x128xf32>
    %cst_49 = arith.constant 0.000000e+00 : f32
    %80 = vector.broadcast %cst_49 : f32 to vector<128x128xf32>
    %81 = arith.select %79, %74, %80 : vector<128x128xi1>, vector<128x128xf32>
    %82 = vector.extract_strided_slice %71 {offsets = [0, 0], sizes = [32, 128], strides = [1, 1]} : vector<96x128xf32> to vector<32x128xf32>
    %cst_50 = arith.constant dense<0.000000e+00> : vector<32x128xf32>
    %83 = tpu.matmul %82, %81, %cst_50 {dimension_numbers = #tpu.dot_dimension_numbers<[1], [0], [0], [1], [0, 0, 1, 1], [], []>} : vector<32x128xf32>, vector<128x128xf32>, vector<32x128xf32> -> vector<32x128xf32>
    %cst_51 = arith.constant 1.000000e+00 : f32
    %84 = vector.broadcast %cst_51 : f32 to vector<128x128xf32>
    %85 = arith.cmpf oeq, %77, %84 : vector<128x128xf32>
    %cst_52 = arith.constant 0.000000e+00 : f32
    %86 = vector.broadcast %cst_52 : f32 to vector<128x128xf32>
    %87 = arith.select %85, %74, %86 : vector<128x128xi1>, vector<128x128xf32>
    %88 = vector.extract_strided_slice %71 {offsets = [32, 0], sizes = [32, 128], strides = [1, 1]} : vector<96x128xf32> to vector<32x128xf32>
    %cst_53 = arith.constant dense<0.000000e+00> : vector<32x128xf32>
    %89 = tpu.matmul %88, %87, %cst_53 {dimension_numbers = #tpu.dot_dimension_numbers<[1], [0], [0], [1], [0, 0, 1, 1], [], []>} : vector<32x128xf32>, vector<128x128xf32>, vector<32x128xf32> -> vector<32x128xf32>
    %90 = arith.addf %83, %89 : vector<32x128xf32>
    %cst_54 = arith.constant 2.000000e+00 : f32
    %91 = vector.broadcast %cst_54 : f32 to vector<128x128xf32>
    %92 = arith.cmpf oeq, %77, %91 : vector<128x128xf32>
    %cst_55 = arith.constant 0.000000e+00 : f32
    %93 = vector.broadcast %cst_55 : f32 to vector<128x128xf32>
    %94 = arith.select %92, %74, %93 : vector<128x128xi1>, vector<128x128xf32>
    %95 = vector.extract_strided_slice %71 {offsets = [64, 0], sizes = [32, 128], strides = [1, 1]} : vector<96x128xf32> to vector<32x128xf32>
    %cst_56 = arith.constant dense<0.000000e+00> : vector<32x128xf32>
    %96 = tpu.matmul %95, %94, %cst_56 {dimension_numbers = #tpu.dot_dimension_numbers<[1], [0], [0], [1], [0, 0, 1, 1], [], []>} : vector<32x128xf32>, vector<128x128xf32>, vector<32x128xf32> -> vector<32x128xf32>
    %97 = arith.addf %90, %96 : vector<32x128xf32>
    %98 = arith.addf %22, %97 : vector<32x128xf32>
    %cst_57 = arith.constant dense<0.000000e+00> : vector<128xf32>
    %99 = vector.multi_reduction <add>, %98, %cst_57 [0] : vector<32x128xf32> to vector<128xf32>
    %100 = vector.shape_cast %99 : vector<128xf32> to vector<1x128xf32>
    %cst_58 = arith.constant 3.200000e+01 : f32
    %101 = vector.broadcast %cst_58 : f32 to vector<1x128xf32>
    %102 = arith.divf %100, %101 : vector<1x128xf32>
    %103 = vector.broadcast %102 : vector<1x128xf32> to vector<32x128xf32>
    %104 = arith.subf %98, %103 : vector<32x128xf32>
    %105 = arith.mulf %104, %104 : vector<32x128xf32>
    %cst_59 = arith.constant dense<0.000000e+00> : vector<128xf32>
    %106 = vector.multi_reduction <add>, %105, %cst_59 [0] : vector<32x128xf32> to vector<128xf32>
    %107 = vector.shape_cast %106 : vector<128xf32> to vector<1x128xf32>
    %cst_60 = arith.constant 3.200000e+01 : f32
    %108 = vector.broadcast %cst_60 : f32 to vector<1x128xf32>
    %109 = arith.divf %107, %108 : vector<1x128xf32>
    %110 = vector.broadcast %102 : vector<1x128xf32> to vector<32x128xf32>
    %111 = arith.subf %98, %110 : vector<32x128xf32>
    %cst_61 = arith.constant 9.99999974E-6 : f32
    %112 = vector.broadcast %cst_61 : f32 to vector<1x128xf32>
    %113 = arith.addf %109, %112 : vector<1x128xf32>
    %114 = math.rsqrt %113 : vector<1x128xf32>
    %115 = vector.broadcast %114 : vector<1x128xf32> to vector<32x128xf32>
    %116 = arith.mulf %111, %115 : vector<32x128xf32>
    %117 = vector.broadcast %11 : vector<32x1xf32> to vector<32x128xf32>
    %118 = vector.broadcast %27 : vector<1x128xf32> to vector<32x128xf32>
    %119 = arith.mulf %117, %118 : vector<32x128xf32>
    %120 = vector.broadcast %13 : vector<32x1xf32> to vector<32x128xf32>
    %121 = vector.broadcast %31 : vector<1x128xf32> to vector<32x128xf32>
    %122 = arith.mulf %120, %121 : vector<32x128xf32>
    %123 = arith.addf %119, %122 : vector<32x128xf32>
    %124 = arith.mulf %116, %123 : vector<32x128xf32>
    %125 = vector.broadcast %15 : vector<32x1xf32> to vector<32x128xf32>
    %126 = vector.broadcast %27 : vector<1x128xf32> to vector<32x128xf32>
    %127 = arith.mulf %125, %126 : vector<32x128xf32>
    %128 = vector.broadcast %17 : vector<32x1xf32> to vector<32x128xf32>
    %129 = vector.broadcast %31 : vector<1x128xf32> to vector<32x128xf32>
    %130 = arith.mulf %128, %129 : vector<32x128xf32>
    %131 = arith.addf %127, %130 : vector<32x128xf32>
    %132 = arith.addf %124, %131 : vector<32x128xf32>
    %cst_62 = arith.constant 0.000000e+00 : f32
    %133 = vector.broadcast %cst_62 : f32 to vector<32x128xf32>
    %134 = arith.cmpf oge, %132, %133 : vector<32x128xf32>
    %cst_63 = arith.constant 0.00999999977 : f32
    %135 = vector.broadcast %cst_63 : f32 to vector<32x128xf32>
    %136 = arith.mulf %135, %132 : vector<32x128xf32>
    %137 = arith.select %134, %132, %136 : vector<32x128xi1>, vector<32x128xf32>
    %cst_64 = arith.constant dense<0.000000e+00> : vector<64x128xf32>
    %138 = tpu.matmul %1, %137, %cst_64 {dimension_numbers = #tpu.dot_dimension_numbers<[1], [0], [0], [1], [0, 0, 1, 1], [], []>} : vector<64x32xf32>, vector<32x128xf32>, vector<64x128xf32> -> vector<64x128xf32>
    %139 = vector.extract_strided_slice %138 {offsets = [0, 0], sizes = [32, 128], strides = [1, 1]} : vector<64x128xf32> to vector<32x128xf32>
    %140 = vector.broadcast %27 : vector<1x128xf32> to vector<32x128xf32>
    %141 = arith.mulf %139, %140 : vector<32x128xf32>
    %142 = vector.extract_strided_slice %138 {offsets = [32, 0], sizes = [32, 128], strides = [1, 1]} : vector<64x128xf32> to vector<32x128xf32>
    %143 = vector.broadcast %31 : vector<1x128xf32> to vector<32x128xf32>
    %144 = arith.mulf %142, %143 : vector<32x128xf32>
    %145 = arith.addf %141, %144 : vector<32x128xf32>
    %146 = arith.addf %98, %145 : vector<32x128xf32>
    %147 = vector.broadcast %19 : vector<32x1xf32> to vector<32x128xf32>
    %148 = vector.broadcast %27 : vector<1x128xf32> to vector<32x128xf32>
    %149 = arith.mulf %147, %148 : vector<32x128xf32>
    %150 = vector.broadcast %21 : vector<32x1xf32> to vector<32x128xf32>
    %151 = vector.broadcast %31 : vector<1x128xf32> to vector<32x128xf32>
    %152 = arith.mulf %150, %151 : vector<32x128xf32>
    %153 = arith.addf %149, %152 : vector<32x128xf32>
    %154 = arith.addf %146, %153 : vector<32x128xf32>
    %c0_65 = arith.constant 0 : index
    %c0_66 = arith.constant 0 : index
    %155 = vector.load %arg8[%c0_65, %c0_66] : memref<32x128xf32, #tpu.memory_space<vmem>>, vector<32x128xf32>
    tpu.vector_store %arg8[%c0_65, %c0_66], %154 {strides = array<i32>} : memref<32x128xf32, #tpu.memory_space<vmem>>, vector<32x128xf32>,
    return
  }
  func.func @transform_0(%arg0: i32) -> (i32, i32) {
    %c0_i32 = arith.constant 0 : i32
    %c0_i32_0 = arith.constant 0 : i32
    return %c0_i32, %arg0 : i32, i32
  }
  func.func @transform_1(%arg0: i32) -> (i32, i32, i32) {
    %c0_i32 = arith.constant 0 : i32
    %c0_i32_0 = arith.constant 0 : i32
    %c0_i32_1 = arith.constant 0 : i32
    return %arg0, %c0_i32, %c0_i32_0 : i32, i32, i32
  }
  func.func @transform_2(%arg0: i32) -> (i32, i32, i32) {
    %c0_i32 = arith.constant 0 : i32
    %c0_i32_0 = arith.constant 0 : i32
    %c0_i32_1 = arith.constant 0 : i32
    return %arg0, %c0_i32, %c0_i32_0 : i32, i32, i32
  }
  func.func @transform_3(%arg0: i32) -> (i32, i32) {
    %c0_i32 = arith.constant 0 : i32
    %c0_i32_0 = arith.constant 0 : i32
    return %c0_i32, %arg0 : i32, i32
  }
  func.func @transform_4(%arg0: i32) -> (i32, i32, i32) {
    %c0_i32 = arith.constant 0 : i32
    %c0_i32_0 = arith.constant 0 : i32
    %c0_i32_1 = arith.constant 0 : i32
    %c0_i32_2 = arith.constant 0 : i32
    return %c0_i32, %c0_i32_0, %c0_i32_1 : i32, i32, i32
  }
  func.func @transform_5(%arg0: i32) -> (i32, i32) {
    %c0_i32 = arith.constant 0 : i32
    %c0_i32_0 = arith.constant 0 : i32
    %c0_i32_1 = arith.constant 0 : i32
    return %c0_i32, %c0_i32_0 : i32, i32
  }
  func.func @transform_6(%arg0: i32) -> (i32, i32) {
    %c0_i32 = arith.constant 0 : i32
    %c0_i32_0 = arith.constant 0 : i32
    %c0_i32_1 = arith.constant 0 : i32
    return %c0_i32, %c0_i32_0 : i32, i32
  }
  func.func @transform_7(%arg0: i32) -> (i32, i32) {
    %c0_i32 = arith.constant 0 : i32
    %c0_i32_0 = arith.constant 0 : i32
    return %c0_i32, %arg0 : i32, i32
  }
}

</mosaic_0001>

<bundles_post_ra>
// kernel: run.1
= control target key start
LH: loop header
LB: loop body
LE: loop exit
PB: predicated region body
PF: predicated region fallthrough
CT: control target
= control target key end

     0   :  { %s1625_s24 = smov 0   ;;  %s1627_s25 = smov 0   ;;  %s2189_s0 = inlined_call_operand.vmem [shape: f32[32,256], index: 0, kind: input, shape index: {}, may-alias: {0,7}]   ;;  %s2190_s1 = inlined_call_operand.vmem [shape: s8[2,128,128], index: 1, kind: input, shape index: {}]   ;;  %s2191_s2 = inlined_call_operand.vmem [shape: s8[2,128,128], index: 2, kind: input, shape index: {}]   ;;  %s2192_s3 = inlined_call_operand.vmem [shape: f32[8,256], index: 3, kind: input, shape index: {}]   ;;  %s2193_s4 = inlined_call_operand.vmem [shape: f32[5,32,2], index: 4, kind: input, shape index: {}]   ;;  %s2194_s5 = inlined_call_operand.vmem [shape: f32[96,32], index: 5, kind: input, shape index: {}]   ;;  %s2195_s6 = inlined_call_operand.vmem [shape: f32[64,32], index: 6, kind: input, shape index: {}]   ;;  %s2196_s7 = inlined_call_operand.vmem [shape: f32[32,256], index: 7, kind: output, shape index: {}, may-alias: {0,7}]  }
   0x1   :  { %s1629_s26 = smov 0  }
   0x2 LB: > { %s1641_s27 = sadd.s32 4294967295, %s1579_s26   ;;  %s1644_s28 = sadd.s32 1, %s1579_s26   ;;  %s1579_s26 = sphi %s1629_s26, %s2200_s26   ;;  %s1575_s25 = sphi %s1627_s25, %s2199_s25   ;;  %s1571_s24 = sphi %s1625_s24, %s2198_s24  }
   0x3   : > { %s21_s29 = ssub.s32 %s1579_s26, %s1644_s28  ;;  %s24_s30 = sadd.s32 1, %s1575_s25 }
   0x4   : > { %p22_p0 = scmp.eq.s32.totalorder %s21_s29, 0  ;;  %p31_p1 = scmp.ne.s32.totalorder %s1575_s25, %s1571_s24 }
   0x5   : > { %p32_p2 = scmp.eq.s32.totalorder %s1579_s26, 0  ;;  %p202_p3 = scmp.eq.s32.totalorder %s1641_s27, 1 }
   0x6   : > { %s1654_s8 = scalar_select %p22_p0, %s1575_s25, %s24_s30  }
   0x7   : > { %p33_p4 = por %p32_p2, %p31_p1  ;;  %p1656_p5 = por %p202_p3, %p31_p1 }
   0x8   : > { %p1398_p6 = scmp.ge.s32.totalorder %s1579_s26, 2 }
   0xa   : > { %233 = sbr.rel (%p1398_p6) target bundleno = 23 (0x17), region = 28 }
   0xf   : > { %236 = sbr.rel (!%p33_p4) target bundleno = 23 (0x17), region = 32  ;;  %s238_s10 = sand.u32 (%p33_p4), 1, %s1575_s25  }
  0x10   : > { %s1400_s11 = sshll.u32 (%p33_p4), %s1579_s26, 3  ;;  %s1399_s12 = sshll.u32 (%p33_p4), %s238_s10, 5 }
  0x11   : > { %s242_s15 = scalar_lea.vmem (%p33_p4), %s2189_s0, %s1400_s11  ;;  %s240_s16 = scalar_lea.vmem (%p33_p4), [#allocation2], %s1399_s12 }
  0x12   : > { %v277_v0 = vld [vmem:[%s242_s15] sm:$0xff] (%p33_p4)  ;;  %v279_v1 = vld [vmem:[%s242_s15 + $0x10] sm:$0xff] (%p33_p4) }
  0x13   : > { %v281_v2 = vld [vmem:[%s242_s15 + $0x20] sm:$0xff] (%p33_p4)  ;;  %278 = vst [vmem:[%s240_s16] sm:$0xff] (%p33_p4), %v277_v0  ;;  %v283_v3 = vld [vmem:[%s242_s15 + $0x30] sm:$0xff] (%p33_p4) }
  0x14   : > { %280 = vst [vmem:[%s240_s16 + $0x8] sm:$0xff] %v279_v1 }
  0x15   : > { %282 = vst [vmem:[%s240_s16 + $0x10] sm:$0xff] %v281_v2 }
  0x16   : > { %284 = vst [vmem:[%s240_s16 + $0x18] sm:$0xff] %v283_v3 }
  0x17 PF: > { %p1401_p7 = scmp.ge.s32.totalorder %s1579_s26, 1  ;;  %p312_p8 = scmp.lt.s32.totalorder %s1579_s26, 3 }
  0x19   : > { %p313_p9 = pnand %p1401_p7, %p312_p8 }
  0x1a   : > { %s319_s10 = sand.u32 (!%p313_p9), 1, %s1571_s24   ;;  %p363_p10 = scmp.lt.s32.totalorder (!%p313_p9), %s1641_s27, 1 }
  0x1b   : > { %316 = sbr.rel (%p313_p9) target bundleno = 831 (0x33f), region = 82  ;;  %s1697_s15 = sshll.u32 (!%p313_p9), %s319_s10, 5 }
  0x1c   : > { %s321_s17 = scalar_lea.vmem (!%p313_p9), [#allocation2], %s1697_s15 }
  0x20   : > { %v1412_v4 = vld [vmem:[%s2193_s4 + $0x38] sm:$0xff]  ;;  %v399_v6 = vld [vmem:[%s2193_s4 + $0x10] sm:$0xff]  ;;  %v1581_v7 = vmov 0   ;;  %v1582_v9 = vmov 1   ;;  %v398_v10 = vld [vmem:[%s2193_s4 + $0x8] sm:$0xff]  ;;  %v1583_v18 = vmov 32.0  }
  0x21   : > { %v400_v5 = vld [vmem:[%s2193_s4 + $0x18] sm:$0xff]  ;;  %1532 = vset.pattern.permute.xlu2 %v1581_v7  ;;  %1530 = vset.pattern.permute.xlu1 %v1581_v7  ;;  %v1411_v8 = vld [vmem:[%s2193_s4 + $0x30] sm:$0xff]  ;;  %v1410_v11 = vld [vmem:[%s2193_s4 + $0x28] sm:$0xff]  ;;  %1551 = vrcp.f32 %v1583_v18  ;;  %s1757_s26 = scalar_select %p363_p10, %s1641_s27, 1  ;;  %vm600_vm10 = vcmask 261120  }
  0x22   : > { %1529 = vset.pattern.permute.xlu0 %v1581_v7  ;;  %553 = vperm.xlu2 %1532, %v1412_v4   ;;  %v397_v12 = vld [vmem:[%s2193_s4] sm:$0xff]  ;;  %v1414_v13 = vld [vmem:[%s2193_s4 + $0x48] sm:$0xff]  ;;  %v1711_v17 = vld [vmem:[%s321_s17 + $0x10] sm:$0xff] }
  0x23   : > { %499 = vperm.xlu0 %1529, %v400_v5   ;;  %494 = vperm.xlu1 %1530, %v399_v6   ;;  %v1705_v14 = vld [vmem:[%s321_s17] sm:$0xff]  ;;  %v1707_v15 = vld [vmem:[%s321_s17 + $0x8] sm:$0xff]  ;;  %v1714_v20 = vld [vmem:[%s321_s17 + $0x18] sm:$0xff]  ;;  %s1408_s29 = sshll.u32 %s1757_s26, 3  ;;  %s1499_s18 = sshll.u32 %s1757_s26, 5 }
  0x24   : > { %v432_v16 = vadd.f32 %v1707_v15, %v1705_v14  ;;  %v1409_v26 = vld [vmem:[%s2193_s4 + $0x20] sm:$0xff]  ;;  %v1416_v35 = vld [vmem:[%s2193_s4 + $0x58] sm:$0xff]  ;;  %s376_s11 = scalar_lea.vmem %s2192_s3, %s1408_s29  ;;  %s1837_s23 = scalar_lea.vmem %s2191_s2, %s1499_s18 }
  0x25   : > { %v1745_v42 = vld [vmem:[%s2193_s4 + $0x78] sm:$0xff]  ;;  %v425_v1 = vld [vmem:[%s376_s11] sm:$0x1]  ;;  %s1843_s10 = scalar_lea.vmem %s2190_s1, %s1499_s18  ;;  %s2151_s26 = scalar_lea.vmem [#allocation3], %s1697_s15 }
  0x26   : > { %v433_v19 = vadd.f32 %v432_v16, %v1711_v17  ;;  %vm426_vm1 = vcmp.eq.f32.partialorder %v425_v1, 0.0  ;;  %vm429_vm2 = vcmp.eq.f32.partialorder %v425_v1, 1.0  ;;  %s1496_s15 = sshll.u32 (%p1656_p5), %s1641_s27, 3 }
  0x27   : > { %v1552_v23 = vpop.eup %1551  ;;  %s1257_s13 = scalar_lea.vmem (%p1656_p5), %s2196_s7, %s1496_s15 }
  0x28   : > { %v434_v21 = vadd.f32 %v433_v19, %v1714_v20  ;;  %v442_v25 = vmul.f32 32.0, %v1552_v23  ;;  %vm446_vm0 = vweird.f32 %v1552_v23 }
  0x2a   : > { %1533 = vset.pattern.permute.xlu2 %v1582_v9  ;;  %v435_v22 = vrot.slane %v434_v21, 4  ;;  %v443_v28 = vsub.f32 1.0, %v442_v25 }
  0x2b   : > { %548 = vperm.xlu0 %1529, %v1411_v8   ;;  %1531 = vset.pattern.permute.xlu1 %v1582_v9 }
  0x2c   : > { %573 = vperm.xlu2 %1533, %v1412_v4   ;;  %516 = vperm.xlu1 %1531, %v399_v6   ;;  %v436_v24 = vadd.f32 %v435_v22, %v434_v21  ;;  %v444_v30 = vmul.f32 %v1552_v23, %v443_v28  ;;  %v1584_v6 = vmov 0.0  }
  0x2e   : > { %v437_v27 = vrot.slane %v436_v24, 2  ;;  %v445_v32 = vadd.f32 %v1552_v23, %v444_v30 }
  0x30   : > { %v438_v29 = vadd.f32 %v437_v27, %v436_v24  ;;  %v1723_v34 = vsel %vm446_vm0, %v1552_v23, %v445_v32 }
  0x32   : > { %v439_v31 = vrot.slane %v438_v29, 1 }
  0x33   : > { %1535 = vset.pattern.permute.xlu0 %v1582_v9 }
  0x34   : > { %520 = vperm.xlu0 %1535, %v400_v5   ;;  %1534 = vset.pattern.permute.xlu1 %v1581_v7  ;;  %v440_v33 = vadd.f32 %v439_v31, %v438_v29 }
  0x35   : > { %512 = vperm.xlu2 %1533, %v398_v10   ;;  %489 = vperm.xlu1 %1534, %v398_v10   ;;  %v1426_v10 = vsel %vm429_vm2, 1.0, %v1584_v6 }
  0x36   : > { %v448_v36 = vmul.f32 %v1723_v34, %v440_v33  ;;  %v1765_v16 = vperm.slane %v1426_v10, 0 }
  0x38   : > { %v1730_v37 = vsub.f32 %v1705_v14, %v448_v36  ;;  %v1733_v38 = vsub.f32 %v1707_v15, %v448_v36  ;;  %v1736_v39 = vsub.f32 %v1711_v17, %v448_v36  ;;  %v452_v43 = vsub.f32 %v1714_v20, %v448_v36 }
  0x3a   : > { %v453_v40 = vmul.f32 %v1730_v37, %v1730_v37  ;;  %v454_v41 = vmul.f32 %v1733_v38, %v1733_v38  ;;  %v455_v44 = vmul.f32 %v1736_v39, %v1736_v39  ;;  %v456_v46 = vmul.f32 %v452_v43, %v452_v43 }
  0x3c   : > { %565 = vperm.xlu0 %1535, %v1410_v11   ;;  %v457_v45 = vadd.f32 %v454_v41, %v453_v40 }
  0x3d   : > { %1537 = vset.pattern.permute.xlu2 %v1581_v7  ;;  %1536 = vset.pattern.permute.xlu1 %v1582_v9 }
  0x3e   : > { %484 = vperm.xlu2 %1537, %v397_v12   ;;  %569 = vperm.xlu1 %1536, %v1411_v8   ;;  %v458_v47 = vadd.f32 %v457_v45, %v455_v44  ;;  %v1425_v8 = vsel %vm426_vm1, 1.0, %v1584_v6 }
  0x40   : > { %v459_v48 = vadd.f32 %v458_v47, %v456_v46 }
  0x42   : > { %v460_v49 = vrot.slane %v459_v48, 4 }
  0x44   : > { %1025 = vperm.xlu0 %1535, %v1414_v13   ;;  %v461_v50 = vadd.f32 %v460_v49, %v459_v48 }
  0x46   : > { %543 = vperm.xlu2 %1537, %v1410_v11   ;;  %508 = vperm.xlu1 %1536, %v397_v12   ;;  %v462_v51 = vrot.slane %v461_v50, 2 }
  0x48   : > { %v463_v52 = vadd.f32 %v462_v51, %v461_v50 }
  0x4a   : > { %v464_v53 = vrot.slane %v463_v52, 1 }
  0x4c   : > { %1542 = vset.pattern.permute.xlu0 %v1581_v7  ;;  %v465_v54 = vadd.f32 %v464_v53, %v463_v52 }
  0x4e   : > { %1539 = vset.pattern.permute.xlu2 %v1582_v9  ;;  %1538 = vset.pattern.permute.xlu1 %v1581_v7  ;;  %v466_v55 = vmul.f32 %v465_v54, %v1723_v34 }
  0x4f   : > { %561 = vperm.xlu2 %1539, %v1409_v26   ;;  %538 = vperm.xlu1 %1538, %v1409_v26  }
  0x50   : > { %v467_v57 = vadd.f32 1e-05, %v466_v55 }
  0x52   : > { %1553 = vrsqrt.f32 %v467_v57  ;;  %vm474_vm3 = vweird.f32 %v467_v57 }
  0x57   : > { %1033 = vperm.xlu2 %1539, %v1416_v35   ;;  %1013 = vperm.xlu1 %1538, %v1416_v35  }
  0x58   : > { %v1554_v59 = vpop.eup %1553 }
  0x59   : > { %v469_v60 = vmul.f32 %v1554_v59, %v467_v57  ;;  %vm475_vm4 = vweird.f32 %v1554_v59 }
  0x5a   : > { %vm476_vm5 = vmor %vm474_vm3, %vm475_vm4 }
  0x5b   : > { %v470_v63 = vmul.f32 %v1554_v59, %v469_v60 }
  0x5d   : > { %v471_v2 = vmul.f32 0.5, %v470_v63 }
  0x5f   : > { %1541 = vset.pattern.permute.xlu2 %v1581_v7  ;;  %1540 = vset.pattern.permute.xlu1 %v1582_v9  ;;  %v472_v5 = vsub.f32 1.5, %v471_v2 }
  0x60   : > { %1065 = vperm.xlu2 %1541, %v1745_v42  }
  0x61   : > { %v473_v12 = vmul.f32 %v1554_v59, %v472_v5 }
  0x63   : > { %v477_v19 = vsel %vm476_vm5, %v1554_v59, %v473_v12 }
  0x64   : > { %v481_v24 = vmul.f32 %v477_v19, %v452_v43  ;;  %v479_v35 = vmul.f32 %v477_v19, %v1733_v38  ;;  %v480_v44 = vmul.f32 %v477_v19, %v1736_v39  ;;  %v478_v2 = vmul.f32 %v477_v19, %v1730_v37  ;;  %v378_v37 = vld [vmem:[%s2194_s5 + $0x8] sm:$0xff]  ;;  %v379_v19 = vld [vmem:[%s2194_s5 + $0x10] sm:$0xff] }
  0x68   : > { %1003 = vperm.xlu2 %1541, %v1414_v13   ;;  %v1763_v13 = vperm.slane %v1425_v8, 0 }
  0x70   : > { %1544 = vset.pattern.permute.xlu2 %v1582_v9 }
  0x7c   : > { %v554_v56 = vpop.permute.xlu2 %553 }
  0x7d   : > { %v559_v22 = vmul.f32 %v554_v56, %v1763_v13 }
  0x86   : > { %v574_v58 = vpop.permute.xlu2 %573 }
  0x87   : > { %v579_v23 = vmul.f32 %v574_v58, %v1765_v16 }
  0x89   : > { %v583_v29 = vadd.f32 %v579_v23, %v559_v22  ;;  %v381_v22 = vld [vmem:[%s2194_s5 + $0x20] sm:$0xff]  ;;  %v382_v23 = vld [vmem:[%s2194_s5 + $0x28] sm:$0xff] }
  0x8f   : > { %v513_v0 = vpop.permute.xlu2 %512 }
  0x90   : > { %v525_v30 = vmul.f32 %v1765_v16, %v513_v0 }
  0x95   : > { %v495_v61 = vpop.permute.xlu1 %494  ;;  %v500_v62 = vpop.permute.xlu0 %499 }
  0x96   : > { %v506_v18 = vmul.f32 %v1763_v13, %v500_v62  ;;  %v505_v36 = vmul.f32 %v1763_v13, %v495_v61 }
  0x98   : > { %v485_v11 = vpop.permute.xlu2 %484 }
  0x99   : > { %v503_v63 = vmul.f32 %v1763_v13, %v485_v11 }
  0x9d   : > { %v549_v3 = vpop.permute.xlu0 %548 }
  0x9e   : > { %v517_v4 = vpop.permute.xlu1 %516  ;;  %v558_v49 = vmul.f32 %v549_v3, %v1763_v13 }
  0x9f   : > { %v526_v31 = vmul.f32 %v1765_v16, %v517_v4 }
  0xa0   : > { %v544_v33 = vpop.permute.xlu2 %543 }
  0xa1   : > { %v557_v40 = vmul.f32 %v544_v33, %v1763_v13  ;;  %v530_v46 = vadd.f32 %v526_v31, %v505_v36  ;;  %v693_v31 = vld [vmem:[%s1843_s10 + $0x18] sm:$0xff] }
  0xa2   : > { %v709_v33 = vunpack.c.3.s8 %v693_v31  ;;  %v708_v36 = vunpack.c.2.s8 %v693_v31 }
  0xa3   : > { %v534_v54 = vmul.f32 %v530_v46, %v480_v44 }
  0xa6   : > { %v521_v21 = vpop.permute.xlu0 %520 }
  0xa7   : > { %v527_v25 = vmul.f32 %v1765_v16, %v521_v21  ;;  %v490_v26 = vpop.permute.xlu1 %489  ;;  %v380_v21 = vld [vmem:[%s2194_s5 + $0x18] sm:$0xff] }
  0xa8   : > { %v504_v28 = vmul.f32 %v1763_v13, %v490_v26  ;;  %v385_v26 = vld [vmem:[%s2194_s5 + $0x40] sm:$0xff] }
  0xa9   : > { %v531_v27 = vadd.f32 %v527_v25, %v506_v18  ;;  %v562_v0 = vpop.permute.xlu2 %561  ;;  %v377_v18 = vld [vmem:[%s2194_s5] sm:$0xff]  ;;  %v384_v25 = vld [vmem:[%s2194_s5 + $0x38] sm:$0xff] }
  0xaa   : > { %v529_v41 = vadd.f32 %v525_v30, %v504_v28  ;;  %v576_v1 = vmul.f32 %v562_v0, %v1765_v16  ;;  %v387_v28 = vld [vmem:[%s2194_s5 + $0x50] sm:$0xff]  ;;  %v729_v30 = vld [vmem:[%s1837_s23 + $0x18] sm:$0xff] }
  0xab   : > { %v535_v32 = vmul.f32 %v531_v27, %v481_v24  ;;  %v383_v24 = vld [vmem:[%s2194_s5 + $0x30] sm:$0xff]  ;;  %v386_v27 = vld [vmem:[%s2194_s5 + $0x48] sm:$0xff]  ;;  %v743_v44 = vunpack.c.1.s8 %v729_v30 }
  0xac   : > { %v533_v51 = vmul.f32 %v529_v41, %v479_v35  ;;  %v707_v41 = vunpack.c.1.s8 %v693_v31 }
  0xad   : > { %v587_v43 = vadd.f32 %v583_v29, %v535_v32  ;;  %v388_v29 = vld [vmem:[%s2194_s5 + $0x58] sm:$0xff]  ;;  %v745_v32 = vunpack.c.3.s8 %v729_v30 }
  0xae   : > { %v566_v45 = vpop.permute.xlu0 %565 }
  0xaf   : > { %v577_v47 = vmul.f32 %v566_v45, %v1765_v16  ;;  %vm591_vm6 = vcmp.ge.f32.partialorder %v587_v43, 0.0  ;;  %v595_v48 = vmul.f32 0.01, %v587_v43  ;;  %v1847_v35 = vcvt.s32.f32 %v745_v32 }
  0xb0   : > { %v570_v50 = vpop.permute.xlu1 %569  ;;  %v1852_v45 = vcvt.s32.f32 %v708_v36 }
  0xb1   : > { %v581_v52 = vadd.f32 %v577_v47, %v557_v40  ;;  %v578_v38 = vmul.f32 %v570_v50, %v1765_v16  ;;  %v599_v53 = vsel %vm591_vm6, %v587_v43, %v595_v48  ;;  %v744_v40 = vunpack.c.2.s8 %v729_v30 }
  0xb2   : > { %649 = vmatpush.msra.mxu0 %v599_v53  ;;  %v1849_v43 = vcvt.s32.f32 %v709_v33  ;;  %vm809_vm11 = vcmp.eq.f32.partialorder %v1847_v35, 1.0  ;;  %v1857_v47 = vcvt.s32.f32 %v707_v41  ;;  %v1859_v48 = vcvt.s32.f32 %v743_v44 }
  0xb3   : > { %v585_v55 = vadd.f32 %v581_v52, %v533_v51  ;;  %v582_v56 = vadd.f32 %v578_v38, %v558_v49  ;;  %v1854_v46 = vcvt.s32.f32 %v744_v40  ;;  %v742_v49 = vunpack.c.0.s8 %v729_v30  ;;  %v728_v51 = vld [vmem:[%s1837_s23 + $0x10] sm:$0xff]  ;;  %v690_v30 = vld [vmem:[%s1843_s10] sm:$0xff] }
  0xb4   : > { %1439 = vmatpush.msk.msra.mxu2 %vm809_vm11, %v1849_v43  ;;  %vm807_vm13 = vcmp.eq.f32.partialorder %v1859_v48, 1.0  ;;  %v706_v50 = vunpack.c.0.s8 %v693_v31  ;;  %v692_v38 = vld [vmem:[%s1843_s10 + $0x10] sm:$0xff]  ;;  %v741_v53 = vunpack.c.3.s8 %v728_v51  ;;  %v697_v33 = vunpack.c.3.s8 %v690_v30 }
  0xb5   : > { %v586_v57 = vadd.f32 %v582_v56, %v534_v54  ;;  %v593_v58 = vmul.f32 0.01, %v585_v55  ;;  %vm589_vm8 = vcmp.ge.f32.partialorder %v585_v55, 0.0  ;;  %vm808_vm12 = vcmp.eq.f32.partialorder %v1854_v46, 1.0 }
  0xb6   : > { %1440 = vmatpush.msk.msra.mxu2 %vm808_vm12, %v1852_v45  ;;  %v1865_v52 = vcvt.s32.f32 %v742_v49  ;;  %v1869_v54 = vcvt.s32.f32 %v706_v50  ;;  %v1872_v56 = vcvt.s32.f32 %v741_v53  ;;  %v696_v40 = vunpack.c.2.s8 %v690_v30 }
  0xb7   : > { %vm590_vm7 = vcmp.ge.f32.partialorder %v586_v57, 0.0  ;;  %v594_v39 = vmul.f32 0.01, %v586_v57  ;;  %v597_v61 = vsel %vm589_vm8, %v585_v55, %v593_v58  ;;  %v705_v55 = vunpack.c.3.s8 %v692_v38 }
  0xb8   : > { %v509_v59 = vpop.permute.xlu1 %508  ;;  %1441 = vmatpush.msk.msra.mxu2 %vm807_vm13, %v1857_v47  ;;  %vm806_vm14 = vcmp.eq.f32.partialorder %v1865_v52, 1.0  ;;  %vm805_vm15 = vcmp.eq.f32.partialorder %v1872_v56, 1.0  ;;  %v1927_v44 = vcvt.s32.f32 %v697_v33  ;;  %v695_v49 = vunpack.c.1.s8 %v690_v30 }
  0xb9   : > { %v598_v60 = vsel %vm590_vm7, %v586_v57, %v594_v39  ;;  %v524_v62 = vmul.f32 %v1765_v16, %v509_v59  ;;  %v704_v57 = vunpack.c.2.s8 %v692_v38  ;;  %v740_v39 = vunpack.c.2.s8 %v728_v51 }
  0xba   : > { %650 = vmatpush.msra.mxu0 %v598_v60  ;;  %1442 = vmatpush.msk.msra.mxu2 %vm806_vm14, %v1869_v54  ;;  %v1875_v58 = vcvt.s32.f32 %v705_v55  ;;  %v703_v59 = vunpack.c.1.s8 %v692_v38  ;;  %v739_v60 = vunpack.c.1.s8 %v728_v51  ;;  %v1935_v53 = vcvt.s32.f32 %v695_v49 }
  0xbb   : > { %v528_v3 = vadd.f32 %v524_v62, %v503_v63  ;;  %v1880_v62 = vcvt.s32.f32 %v740_v39  ;;  %v694_v39 = vunpack.c.0.s8 %v690_v30  ;;  %vm777_vm12 = vcmp.eq.f32.partialorder %v1847_v35, 0.0 }
  0xbc   : > { %651 = vmatpush.msra.mxu0 %v597_v61  ;;  %v1878_v61 = vcvt.s32.f32 %v704_v57  ;;  %1443 = vmatpush.msk.msra.mxu2 %vm805_vm15, %v1875_v58  ;;  %v1883_v63 = vcvt.s32.f32 %v703_v59  ;;  %v1885_v0 = vcvt.s32.f32 %v739_v60  ;;  %vm776_vm13 = vcmp.eq.f32.partialorder %v1854_v46, 0.0 }
  0xbd   : > { %v532_v6 = vmul.f32 %v528_v3, %v478_v2  ;;  %vm804_vm0 = vcmp.eq.f32.partialorder %v1880_v62, 1.0  ;;  %v702_v2 = vunpack.c.0.s8 %v692_v38  ;;  %v727_v3 = vld [vmem:[%s1837_s23 + $0x8] sm:$0xff]  ;;  %v1945_v60 = vcvt.s32.f32 %v694_v39 }
  0xbe   : > { %1444 = vmatpush.msk.msra.mxu2 %vm804_vm0, %v1878_v61  ;;  %vm803_vm1 = vcmp.eq.f32.partialorder %v1885_v0, 1.0  ;;  %vm899_vm14 = vcmp.eq.f32.partialorder %v1847_v35, 2.0  ;;  %vm898_vm15 = vcmp.eq.f32.partialorder %v1854_v46, 2.0  ;;  %vm775_vm0 = vcmp.eq.f32.partialorder %v1859_v48, 0.0 }
  0xbf   : > { %1471 = vmatpush.msk.msra.mxu3 %vm899_vm14, %v1849_v43 }
  0xc0   : > { %1445 = vmatpush.msk.msra.mxu2 %vm803_vm1, %v1883_v63  ;;  %vm774_vm1 = vcmp.eq.f32.partialorder %v1865_v52, 0.0 }
  0xc1   : > { %v539_v4 = vpop.permute.xlu1 %538  ;;  %1472 = vmatpush.msk.msra.mxu3 %vm898_vm15, %v1852_v45 }
  0xc2   : > { %v556_v5 = vmul.f32 %v539_v4, %v1763_v13 }
  0xc4   : > { %v580_v8 = vadd.f32 %v576_v1, %v556_v5  ;;  %v738_v1 = vunpack.c.0.s8 %v728_v51  ;;  %v691_v5 = vld [vmem:[%s1843_s10 + $0x8] sm:$0xff]  ;;  %v1930_v51 = vcvt.s32.f32 %v696_v40 }
  0xc6   : > { %v584_v10 = vadd.f32 %v580_v8, %v532_v6  ;;  %v1891_v4 = vcvt.s32.f32 %v738_v1  ;;  %v737_v6 = vunpack.c.3.s8 %v727_v3  ;;  %v1895_v8 = vcvt.s32.f32 %v702_v2 }
  0xc8   : > { %vm588_vm9 = vcmp.ge.f32.partialorder %v584_v10, 0.0  ;;  %v592_v12 = vmul.f32 0.01, %v584_v10  ;;  %vm802_vm2 = vcmp.eq.f32.partialorder %v1891_v4, 1.0 }
  0xc9   : > { %1446 = vmatpush.msk.msra.mxu2 %vm802_vm2, %v1895_v8  ;;  %vm897_vm2 = vcmp.eq.f32.partialorder %v1859_v48, 2.0 }
  0xca   : > { %v596_v11 = vsel %vm588_vm9, %v584_v10, %v592_v12  ;;  %v701_v10 = vunpack.c.3.s8 %v691_v5  ;;  %v1898_v12 = vcvt.s32.f32 %v737_v6  ;;  %1473 = vmatpush.msk.msra.mxu3 %vm897_vm2, %v1857_v47  ;;  %v1424_v6 = vld [vmem:[%s2193_s4 + $0x98] sm:$0xff] }
  0xcb   : > { %652 = vmatpush.msra.mxu0 %v596_v11  ;;  %v736_v11 = vunpack.c.2.s8 %v727_v3 }
  0xcc   : > { %1427 = vmatmul.msk.f32.vlgmr.msra.gmra.mxu0 %vm600_vm10, %v377_v18  ;;  %v700_v18 = vunpack.c.2.s8 %v691_v5  ;;  %vm801_vm3 = vcmp.eq.f32.partialorder %v1898_v12, 1.0  ;;  %vm891_vm15 = vcmp.eq.f32.partialorder %v1898_v12, 2.0 }
  0xd4   : > { %1428 = vmatmul.msk.f32.gmra.mxu0 %vm600_vm10, %v378_v37  ;;  %v1901_v37 = vcvt.s32.f32 %v701_v10 }
  0xd6   : > { %1447 = vmatpush.msk.msra.mxu2 %vm801_vm3, %v1901_v37  ;;  %vm773_vm3 = vcmp.eq.f32.partialorder %v1872_v56, 0.0 }
  0xdc   : > { %1429 = vmatmul.msk.f32.gmra.mxu0 %vm600_vm10, %v379_v19  ;;  %v699_v19 = vunpack.c.1.s8 %v691_v5 }
  0xe4   : > { %1430 = vmatmul.msk.f32.gmra.mxu0 %vm600_vm10, %v380_v21  ;;  %v735_v21 = vunpack.c.1.s8 %v727_v3 }
  0xec   : > { %1431 = vmatmul.msk.f32.gmra.mxu0 %vm600_vm10, %v381_v22  ;;  %v1904_v22 = vcvt.s32.f32 %v700_v18 }
  0xf4   : > { %1432 = vmatmul.msk.f32.gmra.mxu0 %vm600_vm10, %v382_v23  ;;  %v1906_v23 = vcvt.s32.f32 %v736_v11 }
  0xf6   : > { %vm800_vm4 = vcmp.eq.f32.partialorder %v1906_v23, 1.0  ;;  %vm768_vm14 = vcmp.eq.f32.partialorder %v1906_v23, 0.0 }
  0xf7   : > { %1448 = vmatpush.msk.msra.mxu2 %vm800_vm4, %v1904_v22  ;;  %vm896_vm4 = vcmp.eq.f32.partialorder %v1865_v52, 2.0  ;;  %v1415_v52 = vld [vmem:[%s2193_s4 + $0x50] sm:$0xff] }
  0xf8   : > { %1474 = vmatpush.msk.msra.mxu3 %vm896_vm4, %v1869_v54  ;;  %1029 = vperm.xlu1 %1540, %v1415_v52  }
  0xf9   : > { %1008 = vperm.xlu0 %1542, %v1415_v52  }
  0xfc   : > { %1433 = vmatmul.msk.f32.gmra.mxu0 %vm600_vm10, %v383_v24  ;;  %v1909_v24 = vcvt.s32.f32 %v699_v19 }
 0x100   : > { %1085 = vperm.xlu1 %1540, %v1745_v42  }
 0x104   : > { %1434 = vmatmul.msk.f32.gmra.mxu0 %vm600_vm10, %v384_v25  ;;  %v1911_v25 = vcvt.s32.f32 %v735_v21 }
 0x106   : > { %vm799_vm5 = vcmp.eq.f32.partialorder %v1911_v25, 1.0 }
 0x107   : > { %1449 = vmatpush.msk.msra.mxu2 %vm799_vm5, %v1909_v24  ;;  %vm772_vm5 = vcmp.eq.f32.partialorder %v1880_v62, 0.0 }
 0x108   : > { %1543 = vset.pattern.permute.xlu1 %v1581_v7 }
 0x10c   : > { %1435 = vmatmul.msk.f32.gmra.mxu0 %vm600_vm10, %v385_v26  ;;  %v734_v26 = vunpack.c.0.s8 %v727_v3  ;;  %v1423_v3 = vld [vmem:[%s2193_s4 + $0x90] sm:$0xff] }
 0x114   : > { %1436 = vmatmul.msk.f32.gmra.mxu0 %vm600_vm10, %v386_v27  ;;  %v698_v27 = vunpack.c.0.s8 %v691_v5  ;;  %v1421_v5 = vld [vmem:[%s2193_s4 + $0x80] sm:$0xff] }
 0x116   : > { %v1921_v32 = vcvt.s32.f32 %v698_v27 }
 0x11c   : > { %1437 = vmatmul.msk.f32.gmra.mxu0 %vm600_vm10, %v387_v28  ;;  %v726_v28 = vld [vmem:[%s1837_s23] sm:$0xff] }
 0x11d   : > { %v733_v31 = vunpack.c.3.s8 %v726_v28  ;;  %v732_v41 = vunpack.c.2.s8 %v726_v28  ;;  %v731_v50 = vunpack.c.1.s8 %v726_v28  ;;  %v730_v57 = vunpack.c.0.s8 %v726_v28 }
 0x11f   : > { %v1924_v36 = vcvt.s32.f32 %v733_v31  ;;  %v1932_v38 = vcvt.s32.f32 %v732_v41  ;;  %v1937_v55 = vcvt.s32.f32 %v731_v50  ;;  %v1942_v59 = vcvt.s32.f32 %v730_v57 }
 0x121   : > { %vm797_vm7 = vcmp.eq.f32.partialorder %v1924_v36, 1.0  ;;  %vm796_vm8 = vcmp.eq.f32.partialorder %v1932_v38, 1.0  ;;  %vm795_vm9 = vcmp.eq.f32.partialorder %v1937_v55, 1.0  ;;  %vm794_vm11 = vcmp.eq.f32.partialorder %v1942_v59, 1.0 }
 0x122   : > { %vm765_vm4 = vcmp.eq.f32.partialorder %v1924_v36, 0.0 }
 0x124   : > { %1438 = vmatmul.msk.f32.gmra.mxu0 %vm600_vm10, %v388_v29  ;;  %v1917_v29 = vcvt.s32.f32 %v734_v26 }
 0x126   : > { %vm798_vm6 = vcmp.eq.f32.partialorder %v1917_v29, 1.0  ;;  %vm766_vm2 = vcmp.eq.f32.partialorder %v1917_v29, 0.0 }
 0x127   : > { %1450 = vmatpush.msk.msra.mxu2 %vm798_vm6, %v1921_v32  ;;  %vm895_vm6 = vcmp.eq.f32.partialorder %v1872_v56, 2.0 }
 0x128   : > { %1475 = vmatpush.msk.msra.mxu3 %vm895_vm6, %v1875_v58  ;;  %vm764_vm6 = vcmp.eq.f32.partialorder %v1932_v38, 0.0 }
 0x129   : > { %1451 = vmatpush.msk.msra.mxu2 %vm797_vm7, %v1927_v44  ;;  %vm771_vm7 = vcmp.eq.f32.partialorder %v1885_v0, 0.0 }
 0x12b   : > { %1452 = vmatpush.msk.msra.mxu2 %vm796_vm8, %v1930_v51  ;;  %vm894_vm8 = vcmp.eq.f32.partialorder %v1880_v62, 2.0 }
 0x12c   : > { %1476 = vmatpush.msk.msra.mxu3 %vm894_vm8, %v1878_v61  ;;  %vm763_vm8 = vcmp.eq.f32.partialorder %v1937_v55, 0.0 }
 0x12d   : > { %1453 = vmatpush.msk.msra.mxu2 %vm795_vm9, %v1935_v53  ;;  %vm770_vm9 = vcmp.eq.f32.partialorder %v1891_v4, 0.0 }
 0x12f   : > { %1454 = vmatpush.msk.msra.mxu2 %vm794_vm11, %v1945_v60  ;;  %vm893_vm11 = vcmp.eq.f32.partialorder %v1885_v0, 2.0 }
 0x130   : > { %1477 = vmatpush.msk.msra.mxu3 %vm893_vm11, %v1883_v63  ;;  %vm762_vm11 = vcmp.eq.f32.partialorder %v1942_v59, 0.0 }
 0x131   : > { %1455 = vmatpush.msk.msrb.mxu2 %vm777_vm12, %v1849_v43  ;;  %vm769_vm12 = vcmp.eq.f32.partialorder %v1898_v12, 0.0 }
 0x133   : > { %1456 = vmatpush.msk.msrb.mxu2 %vm776_vm13, %v1852_v45  ;;  %vm892_vm13 = vcmp.eq.f32.partialorder %v1891_v4, 2.0  ;;  %v1422_v4 = vld [vmem:[%s2193_s4 + $0x88] sm:$0xff] }
 0x134   : > { %1478 = vmatpush.msk.msra.mxu3 %vm892_vm13, %v1895_v8  ;;  %vm884_vm13 = vcmp.eq.f32.partialorder %v1942_v59, 2.0 }
 0x135   : > { %1457 = vmatpush.msk.msrb.mxu2 %vm775_vm0, %v1857_v47  ;;  %vm767_vm0 = vcmp.eq.f32.partialorder %v1911_v25, 0.0 }
 0x136   : > { %1479 = vmatpush.msk.msra.mxu3 %vm891_vm15, %v1901_v37 }
 0x137   : > { %1458 = vmatpush.msk.msrb.mxu2 %vm774_vm1, %v1869_v54  ;;  %vm890_vm1 = vcmp.eq.f32.partialorder %v1906_v23, 2.0  ;;  %v1419_v54 = vld [vmem:[%s2193_s4 + $0x70] sm:$0xff] }
 0x138   : > { %1480 = vmatpush.msk.msra.mxu3 %vm890_vm1, %v1904_v22  ;;  %1081 = vperm.xlu2 %1544, %v1419_v54  }
 0x139   : > { %1459 = vmatpush.msk.msrb.mxu2 %vm773_vm3, %v1875_v58  ;;  %vm889_vm3 = vcmp.eq.f32.partialorder %v1911_v25, 2.0  ;;  %v1418_v58 = vld [vmem:[%s2193_s4 + $0x68] sm:$0xff]  ;;  %1060 = vperm.xlu1 %1543, %v1419_v54  }
 0x13a   : > { %1481 = vmatpush.msk.msra.mxu3 %vm889_vm3, %v1909_v24  ;;  %1055 = vperm.xlu0 %1542, %v1418_v58  }
 0x13b   : > { %1460 = vmatpush.msk.msrb.mxu2 %vm772_vm5, %v1878_v61  ;;  %vm888_vm5 = vcmp.eq.f32.partialorder %v1917_v29, 2.0  ;;  %v1413_v61 = vld [vmem:[%s2193_s4 + $0x40] sm:$0xff] }
 0x13c   : > { %1482 = vmatpush.msk.msra.mxu3 %vm888_vm5, %v1921_v32 }
 0x13d   : > { %1461 = vmatpush.msk.msrb.mxu2 %vm771_vm7, %v1883_v63  ;;  %vm887_vm7 = vcmp.eq.f32.partialorder %v1924_v36, 2.0  ;;  %v1417_v63 = vld [vmem:[%s2193_s4 + $0x60] sm:$0xff] }
 0x13e   : > { %1483 = vmatpush.msk.msra.mxu3 %vm887_vm7, %v1927_v44 }
 0x13f   : > { %1462 = vmatpush.msk.msrb.mxu2 %vm770_vm9, %v1895_v8  ;;  %vm886_vm9 = vcmp.eq.f32.partialorder %v1932_v38, 2.0 }
 0x140   : > { %1484 = vmatpush.msk.msra.mxu3 %vm886_vm9, %v1930_v51  ;;  %1021 = vperm.xlu2 %1544, %v1413_v61  }
 0x141   : > { %1463 = vmatpush.msk.msrb.mxu2 %vm769_vm12, %v1901_v37  ;;  %vm885_vm12 = vcmp.eq.f32.partialorder %v1937_v55, 2.0  ;;  %998 = vperm.xlu1 %1543, %v1413_v61  }
 0x142   : > { %1485 = vmatpush.msk.msra.mxu3 %vm885_vm12, %v1935_v53  ;;  %1200 = vperm.xlu0 %1542, %v1422_v4  }
 0x143   : > { %1464 = vmatpush.msk.msrb.mxu2 %vm768_vm14, %v1904_v22 }
 0x144   : > { %1486 = vmatpush.msk.msra.mxu3 %vm884_vm13, %v1945_v60 }
 0x145   : > { %1465 = vmatpush.msk.msrb.mxu2 %vm767_vm0, %v1909_v24 }
 0x147   : > { %1466 = vmatpush.msk.msrb.mxu2 %vm766_vm2, %v1921_v32 }
 0x148   : > { %1546 = vset.pattern.permute.xlu2 %v1581_v7 }
 0x149   : > { %v1947_v1 = vpop.f32.mrf.mxu0  ;;  %1467 = vmatpush.msk.msrb.mxu2 %vm765_vm4, %v1927_v44  ;;  %1050 = vperm.xlu2 %1546, %v1417_v63  }
 0x14a   : > { %1545 = vset.pattern.permute.xlu1 %v1582_v9  ;;  %1548 = vset.pattern.permute.xlu0 %v1582_v9 }
 0x14b   : > { %1468 = vmatpush.msk.msrb.mxu2 %vm764_vm6, %v1930_v51  ;;  %1077 = vperm.xlu1 %1545, %v1418_v58  }
 0x14c   : > { %1218 = vperm.xlu0 %1548, %v1421_v5  }
 0x14d   : > { %1469 = vmatpush.msk.msrb.mxu2 %vm763_vm8, %v1935_v53 }
 0x14f   : > { %1470 = vmatpush.msk.msrb.mxu2 %vm762_vm11, %v1945_v60 }
 0x151   : > { %v1962_v2 = vpop.f32.mrf.mxu0  ;;  %1195 = vperm.xlu2 %1546, %v1421_v5  }
 0x153   : > { %1073 = vperm.xlu1 %1545, %v1417_v63  }
 0x159   : > { %v1980_v35 = vpop.f32.mrf.mxu0  ;;  %1210 = vperm.xlu2 %1546, %v1424_v6  }
 0x15b   : > { %1547 = vset.pattern.permute.xlu1 %v1581_v7 }
 0x15c   : > { %1205 = vperm.xlu1 %1547, %v1423_v3  }
 0x161   : > { %v663_v43 = vpop.f32.mrf.mxu0  ;;  %1550 = vset.pattern.permute.xlu2 %v1582_v9 }
 0x162   : > { %1226 = vperm.xlu2 %1550, %v1423_v3  }
 0x164   : > { %1549 = vset.pattern.permute.xlu1 %v1582_v9 }
 0x165   : > { %1222 = vperm.xlu1 %1549, %v1422_v4  }
 0x169   : > { %v666_v45 = vpop.f32.mrf.mxu0 }
 0x16a   : > { %842 = vmatmul.f32.vlgmr.msra.gmra.mxu2 %v666_v45 }
 0x16d   : > { %1230 = vperm.xlu1 %1549, %v1424_v6  }
 0x171   : > { %v669_v46 = vpop.f32.mrf.mxu0 }
 0x172   : > { %845 = vmatmul.f32.gmra.mxu2 %v669_v46 }
 0x179   : > { %v672_v47 = vpop.f32.mrf.mxu0 }
 0x17a   : > { %848 = vmatmul.f32.gmra.mxu2 %v672_v47 }
 0x181   : > { %v675_v48 = vpop.f32.mrf.mxu0 }
 0x182   : > { %851 = vmatmul.f32.gmra.mxu2 %v675_v48 }
 0x189   : > { %v678_v56 = vpop.f32.mrf.mxu0 }
 0x18a   : > { %871 = vmatmul.f32.vlgmr.msrb.gmra.mxu2 %v1947_v1  ;;  %932 = vmatmul.f32.vlgmr.msra.gmra.mxu3 %v678_v56 }
 0x191   : > { %v681_v62 = vpop.f32.mrf.mxu0 }
 0x192   : > { %874 = vmatmul.f32.gmra.mxu2 %v1962_v2  ;;  %935 = vmatmul.f32.gmra.mxu3 %v681_v62 }
 0x199   : > { %v684_v42 = vpop.f32.mrf.mxu0 }
 0x19a   : > { %877 = vmatmul.f32.gmra.mxu2 %v1980_v35  ;;  %938 = vmatmul.f32.gmra.mxu3 %v684_v42 }
 0x1a1   : > { %v687_v0 = vpop.f32.mrf.mxu0 }
 0x1a2   : > { %880 = vmatmul.f32.gmra.mxu2 %v663_v43  ;;  %941 = vmatmul.f32.gmra.mxu3 %v687_v0 }
 0x1ed   : > { %v843_v7 = vpop.f32.mrf.mxu2 }
 0x1f5   : > { %v846_v8 = vpop.f32.mrf.mxu2 }
 0x1fd   : > { %v849_v10 = vpop.f32.mrf.mxu2 }
 0x205   : > { %v852_v12 = vpop.f32.mrf.mxu2 }
 0x20d   : > { %v872_v18 = vpop.f32.mrf.mxu2  ;;  %v933_v11 = vpop.f32.mrf.mxu3 }
 0x20e   : > { %v873_v24 = vadd.f32 %v872_v18, %v843_v7  ;;  %v1026_v7 = vpop.permute.xlu0 %1025 }
 0x210   : > { %v945_v27 = vadd.f32 %v933_v11, %v873_v24 }
 0x212   : > { %v2061_v31 = vadd.f32 %v945_v27, %v1705_v14 }
 0x215   : > { %v875_v37 = vpop.f32.mrf.mxu2  ;;  %v936_v19 = vpop.f32.mrf.mxu3 }
 0x216   : > { %v876_v21 = vadd.f32 %v875_v37, %v846_v8 }
 0x218   : > { %v946_v26 = vadd.f32 %v936_v19, %v876_v21 }
 0x21a   : > { %v2058_v29 = vadd.f32 %v946_v26, %v1707_v15  ;;  %v1014_v15 = vpop.permute.xlu1 %1013 }
 0x21c   : > { %v953_v36 = vadd.f32 %v2058_v29, %v2061_v31 }
 0x21d   : > { %v878_v22 = vpop.f32.mrf.mxu2  ;;  %v939_v23 = vpop.f32.mrf.mxu3 }
 0x21e   : > { %v879_v25 = vadd.f32 %v878_v22, %v849_v10  ;;  %v1009_v10 = vpop.permute.xlu0 %1008  ;;  %v1037_v22 = vmul.f32 %v1026_v7, %v1765_v16  ;;  %v389_v7 = vld [vmem:[%s2195_s6] sm:$0xff] }
 0x21f   : > { %v1018_v26 = vmul.f32 %v1009_v10, %v1763_v13  ;;  %v390_v10 = vld [vmem:[%s2195_s6 + $0x8] sm:$0xff] }
 0x220   : > { %v947_v28 = vadd.f32 %v939_v23, %v879_v25 }
 0x222   : > { %v2064_v32 = vadd.f32 %v947_v28, %v1711_v17  ;;  %v1030_v53 = vpop.permute.xlu1 %1029  ;;  %v1034_v17 = vpop.permute.xlu2 %1033 }
 0x223   : > { %v1039_v21 = vmul.f32 %v1034_v17, %v1765_v16  ;;  %v1038_v25 = vmul.f32 %v1030_v53, %v1765_v16 }
 0x224   : > { %v954_v41 = vadd.f32 %v953_v36, %v2064_v32 }
 0x225   : > { %v881_v9 = vpop.f32.mrf.mxu2  ;;  %v942_v30 = vpop.f32.mrf.mxu3 }
 0x226   : > { %v882_v33 = vadd.f32 %v881_v9, %v852_v12 }
 0x228   : > { %v948_v40 = vadd.f32 %v942_v30, %v882_v33 }
 0x22a   : > { %v2070_v44 = vadd.f32 %v948_v40, %v1714_v20  ;;  %v1086_v2 = vpop.permute.xlu1 %1085  ;;  %v1066_v45 = vpop.permute.xlu2 %1065 }
 0x22b   : > { %v1071_v30 = vmul.f32 %v1066_v45, %v1763_v13  ;;  %v1091_v33 = vmul.f32 %v1086_v2, %v1765_v16 }
 0x22c   : > { %v955_v49 = vadd.f32 %v954_v41, %v2070_v44  ;;  %v1056_v41 = vpop.permute.xlu0 %1055 }
 0x22e   : > { %v956_v50 = vrot.slane %v955_v49, 4 }
 0x230   : > { %v957_v51 = vadd.f32 %v956_v50, %v955_v49  ;;  %v1069_v50 = vmul.f32 %v1056_v41, %v1763_v13 }
 0x232   : > { %v958_v14 = vrot.slane %v957_v51, 2  ;;  %v1061_v58 = vpop.permute.xlu1 %1060  ;;  %v1004_v62 = vpop.permute.xlu2 %1003 }
 0x233   : > { %v1017_v24 = vmul.f32 %v1004_v62, %v1763_v13  ;;  %v1070_v36 = vmul.f32 %v1061_v58, %v1763_v13 }
 0x234   : > { %v959_v38 = vadd.f32 %v958_v14, %v957_v51 }
 0x235   : > { %v1041_v51 = vadd.f32 %v1037_v22, %v1017_v24 }
 0x236   : > { %v960_v55 = vrot.slane %v959_v38, 1 }
 0x238   : > { %v961_v57 = vadd.f32 %v960_v55, %v959_v38  ;;  %v1042_v38 = vadd.f32 %v1038_v25, %v1018_v26 }
 0x23a   : > { %v962_v39 = vmul.f32 %v961_v57, %v1723_v34  ;;  %v999_v5 = vpop.permute.xlu1 %998  ;;  %v1082_v6 = vpop.permute.xlu2 %1081 }
 0x23b   : > { %v1016_v28 = vmul.f32 %v999_v5, %v1763_v13  ;;  %v1090_v40 = vmul.f32 %v1082_v6, %v1765_v16 }
 0x23c   : > { %v2075_v59 = vsub.f32 %v2061_v31, %v962_v39  ;;  %v2078_v60 = vsub.f32 %v2058_v29, %v962_v39  ;;  %v965_v20 = vsub.f32 %v2064_v32, %v962_v39  ;;  %v2082_v1 = vsub.f32 %v2070_v44, %v962_v39 }
 0x23e   : > { %v967_v35 = vmul.f32 %v2075_v59, %v2075_v59  ;;  %v968_v43 = vmul.f32 %v2078_v60, %v2078_v60  ;;  %v969_v46 = vmul.f32 %v965_v20, %v965_v20  ;;  %v970_v48 = vmul.f32 %v2082_v1, %v2082_v1 }
 0x240   : > { %v971_v47 = vadd.f32 %v968_v43, %v967_v35 }
 0x242   : > { %v972_v52 = vadd.f32 %v971_v47, %v969_v46  ;;  %v1078_v18 = vpop.permute.xlu1 %1077  ;;  %v1022_v11 = vpop.permute.xlu2 %1021  ;;  %v1095_v47 = vadd.f32 %v1091_v33, %v1071_v30 }
 0x243   : > { %v1036_v9 = vmul.f32 %v1022_v11, %v1765_v16  ;;  %v1089_v49 = vmul.f32 %v1078_v18, %v1765_v16  ;;  %v392_v18 = vld [vmem:[%s2195_s6 + $0x18] sm:$0xff]  ;;  %v393_v11 = vld [vmem:[%s2195_s6 + $0x20] sm:$0xff] }
 0x244   : > { %v973_v54 = vadd.f32 %v972_v52, %v970_v48  ;;  %v1094_v48 = vadd.f32 %v1090_v40, %v1070_v36 }
 0x245   : > { %v1040_v39 = vadd.f32 %v1036_v9, %v1016_v28  ;;  %v1093_v52 = vadd.f32 %v1089_v49, %v1069_v50 }
 0x246   : > { %v974_v56 = vrot.slane %v973_v54, 4 }
 0x248   : > { %v975_v61 = vadd.f32 %v974_v56, %v973_v54 }
 0x24a   : > { %v976_v63 = vrot.slane %v975_v61, 2  ;;  %v1074_v53 = vpop.permute.xlu1 %1073  ;;  %v1051_v17 = vpop.permute.xlu2 %1050 }
 0x24b   : > { %v1088_v57 = vmul.f32 %v1074_v53, %v1765_v16  ;;  %v1068_v2 = vmul.f32 %v1051_v17, %v1763_v13 }
 0x24c   : > { %v977_v42 = vadd.f32 %v976_v63, %v975_v61 }
 0x24e   : > { %v978_v0 = vrot.slane %v977_v42, 1 }
 0x250   : > { %v979_v3 = vadd.f32 %v978_v0, %v977_v42  ;;  %v1092_v42 = vadd.f32 %v1088_v57, %v1068_v2 }
 0x252   : > { %v980_v4 = vmul.f32 %v979_v3, %v1723_v34  ;;  %v1019_v34 = vmul.f32 %v1014_v15, %v1763_v13  ;;  %v1206_v26 = vpop.permute.xlu1 %1205 }
 0x254   : > { %v981_v8 = vadd.f32 1e-05, %v980_v4  ;;  %v1043_v14 = vadd.f32 %v1039_v21, %v1019_v34  ;;  %v396_v21 = vld [vmem:[%s2195_s6 + $0x38] sm:$0xff]  ;;  %v1201_v34 = vpop.permute.xlu0 %1200 }
 0x255   : > { %v1214_v53 = vmul.f32 %v1201_v34, %v1763_v13 }
 0x256   : > { %1555 = vrsqrt.f32 %v981_v8  ;;  %vm988_vm15 = vweird.f32 %v981_v8 }
 0x25a   : > { %v1223_v50 = vpop.permute.xlu1 %1222 }
 0x25b   : > { %v1234_v17 = vmul.f32 %v1223_v50, %v1765_v16 }
 0x25c   : > { %v1556_v12 = vpop.eup %1555  ;;  %v1219_v28 = vpop.permute.xlu0 %1218 }
 0x25d   : > { %v983_v37 = vmul.f32 %v1556_v12, %v981_v8  ;;  %vm989_vm14 = vweird.f32 %v1556_v12  ;;  %v1233_v33 = vmul.f32 %v1219_v28, %v1765_v16  ;;  %v1238_v2 = vadd.f32 %v1234_v17, %v1214_v53 }
 0x25e   : > { %vm990_vm0 = vmor %vm988_vm15, %vm989_vm14 }
 0x25f   : > { %v984_v19 = vmul.f32 %v1556_v12, %v983_v37  ;;  %v394_v37 = vld [vmem:[%s2195_s6 + $0x28] sm:$0xff] }
 0x261   : > { %v985_v23 = vmul.f32 0.5, %v984_v19  ;;  %v395_v19 = vld [vmem:[%s2195_s6 + $0x30] sm:$0xff] }
 0x263   : > { %v986_v27 = vsub.f32 1.5, %v985_v23 }
 0x265   : > { %v987_v15 = vmul.f32 %v1556_v12, %v986_v27  ;;  %v1196_v27 = vpop.permute.xlu2 %1195 }
 0x266   : > { %v1213_v30 = vmul.f32 %v1196_v27, %v1763_v13 }
 0x267   : > { %v991_v55 = vsel %vm990_vm0, %v1556_v12, %v987_v15  ;;  %v391_v12 = vld [vmem:[%s2195_s6 + $0x10] sm:$0xff] }
 0x268   : > { %v994_v35 = vmul.f32 %v991_v55, %v965_v20  ;;  %v992_v43 = vmul.f32 %v991_v55, %v2075_v59  ;;  %v993_v45 = vmul.f32 %v991_v55, %v2078_v60  ;;  %v995_v46 = vmul.f32 %v991_v55, %v2082_v1 }
 0x269   : > { %v1237_v15 = vadd.f32 %v1233_v33, %v1213_v30 }
 0x26a   : > { %v1046_v54 = vmul.f32 %v1042_v38, %v994_v35  ;;  %v1044_v56 = vmul.f32 %v1040_v39, %v992_v43  ;;  %v1045_v58 = vmul.f32 %v1041_v51, %v993_v45  ;;  %v1047_v61 = vmul.f32 %v1043_v14, %v995_v46 }
 0x26b   : > { %v1215_v46 = vmul.f32 %v1206_v26, %v1763_v13 }
 0x26c   : > { %v1098_v62 = vadd.f32 %v1094_v48, %v1046_v54  ;;  %v1097_v63 = vadd.f32 %v1093_v52, %v1045_v58  ;;  %v1099_v0 = vadd.f32 %v1095_v47, %v1047_v61  ;;  %v1096_v3 = vadd.f32 %v1092_v42, %v1044_v56  ;;  %v1231_v61 = vpop.permute.xlu1 %1230 }
 0x26d   : > { %v1211_v51 = vpop.permute.xlu2 %1210 }
 0x26e   : > { %vm1103_vm1 = vcmp.ge.f32.partialorder %v1099_v0, 0.0  ;;  %v1107_v20 = vmul.f32 0.01, %v1099_v0  ;;  %v1106_v4 = vmul.f32 0.01, %v1098_v62  ;;  %vm1102_vm2 = vcmp.ge.f32.partialorder %v1098_v62, 0.0 }
 0x26f   : > { %v1105_v60 = vmul.f32 0.01, %v1097_v63  ;;  %vm1101_vm3 = vcmp.ge.f32.partialorder %v1097_v63, 0.0  ;;  %v1104_v5 = vmul.f32 0.01, %v1096_v3  ;;  %vm1100_vm4 = vcmp.ge.f32.partialorder %v1096_v3, 0.0 }
 0x270   : > { %v1111_v59 = vsel %vm1103_vm1, %v1099_v0, %v1107_v20  ;;  %v1110_v1 = vsel %vm1102_vm2, %v1098_v62, %v1106_v4  ;;  %v1216_v42 = vmul.f32 %v1211_v51, %v1763_v13 }
 0x271   : > { %1148 = vmatpush.msra.mxu1 %v1111_v59  ;;  %v1109_v6 = vsel %vm1101_vm3, %v1097_v63, %v1105_v60  ;;  %v1108_v8 = vsel %vm1100_vm4, %v1096_v3, %v1104_v5  ;;  %v1236_v63 = vmul.f32 %v1231_v61, %v1765_v16 }
 0x273   : > { %1149 = vmatpush.msra.mxu1 %v1110_v1  ;;  %v1240_v4 = vadd.f32 %v1236_v63, %v1216_v42 }
 0x275   : > { %1150 = vmatpush.msra.mxu1 %v1109_v6  ;;  %v1227_v35 = vpop.permute.xlu2 %1226 }
 0x276   : > { %v1235_v48 = vmul.f32 %v1227_v35, %v1765_v16 }
 0x277   : > { %1151 = vmatpush.msra.mxu1 %v1108_v8 }
 0x278   : > { %1487 = vmatmul.msk.f32.vlgmr.msra.gmra.mxu1 %vm600_vm10, %v389_v7  ;;  %v1239_v56 = vadd.f32 %v1235_v48, %v1215_v46 }
 0x280   : > { %1488 = vmatmul.msk.f32.gmra.mxu1 %vm600_vm10, %v390_v10 }
 0x288   : > { %1489 = vmatmul.msk.f32.gmra.mxu1 %vm600_vm10, %v391_v12 }
 0x290   : > { %1490 = vmatmul.msk.f32.gmra.mxu1 %vm600_vm10, %v392_v18 }
 0x298   : > { %1491 = vmatmul.msk.f32.gmra.mxu1 %vm600_vm10, %v393_v11 }
 0x2a0   : > { %1492 = vmatmul.msk.f32.gmra.mxu1 %vm600_vm10, %v394_v37 }
 0x2a8   : > { %1493 = vmatmul.msk.f32.gmra.mxu1 %vm600_vm10, %v395_v19 }
 0x2b0   : > { %1494 = vmatmul.msk.f32.gmra.mxu1 %vm600_vm10, %v396_v21 }
 0x2f5   : > { %v1153_v22 = vpop.f32.mrf.mxu1 }
 0x2f6   : > { %v1177_v36 = vmul.f32 %v1153_v22, %v1763_v13 }
 0x2fd   : > { %v1156_v23 = vpop.f32.mrf.mxu1 }
 0x2fe   : > { %v1178_v55 = vmul.f32 %v1156_v23, %v1763_v13 }
 0x305   : > { %v1159_v24 = vpop.f32.mrf.mxu1 }
 0x306   : > { %v1179_v47 = vmul.f32 %v1159_v24, %v1763_v13 }
 0x30d   : > { %v1162_v25 = vpop.f32.mrf.mxu1 }
 0x30e   : > { %v1180_v0 = vmul.f32 %v1162_v25, %v1763_v13 }
 0x315   : > { %v1165_v9 = vpop.f32.mrf.mxu1 }
 0x316   : > { %v1181_v40 = vmul.f32 %v1165_v9, %v1765_v16 }
 0x318   : > { %v1185_v41 = vadd.f32 %v1181_v40, %v1177_v36 }
 0x31a   : > { %v1189_v49 = vadd.f32 %v1185_v41, %v2061_v31 }
 0x31c   : > { %v1241_v14 = vadd.f32 %v1237_v15, %v1189_v49 }
 0x31d   : > { %v1168_v38 = vpop.f32.mrf.mxu1 }
 0x31e   : > { %1245 = vst [vmem:[%s2151_s26] sm:$0xff] %v1241_v14  ;;  %v1182_v57 = vmul.f32 %v1168_v38, %v1765_v16 }
 0x320   : > { %v1186_v39 = vadd.f32 %v1182_v57, %v1178_v55 }
 0x322   : > { %v1190_v31 = vadd.f32 %v1186_v39, %v2058_v29 }
 0x324   : > { %v1242_v43 = vadd.f32 %v1238_v2, %v1190_v31 }
 0x325   : > { %v1171_v45 = vpop.f32.mrf.mxu1 }
 0x326   : > { %1246 = vst [vmem:[%s2151_s26 + $0x8] sm:$0xff] %v1242_v43  ;;  %v1183_v52 = vmul.f32 %v1171_v45, %v1765_v16 }
 0x328   : > { %v1187_v54 = vadd.f32 %v1183_v52, %v1179_v47 }
 0x32a   : > { %v1191_v58 = vadd.f32 %v1187_v54, %v2064_v32  ;;  %v1292_v32 = vld [vmem:[%s2151_s26] sm:$0xff] (%p1656_p5) }
 0x32b   : > { %1293 = vst [vmem:[%s1257_s13] sm:$0xff] (%p1656_p5), %v1292_v32 }
 0x32c   : > { %v1243_v29 = vadd.f32 %v1239_v56, %v1191_v58 }
 0x32d   : > { %v1174_v62 = vpop.f32.mrf.mxu1  ;;  %v1294_v13 = vld [vmem:[%s2151_s26 + $0x8] sm:$0xff] (%p1656_p5) }
 0x32e   : > { %1247 = vst [vmem:[%s2151_s26 + $0x10] sm:$0xff] %v1243_v29  ;;  %v1184_v3 = vmul.f32 %v1174_v62, %v1765_v16 }
 0x32f   : > { %1295 = vst [vmem:[%s1257_s13 + $0x10] sm:$0xff] (%p1656_p5), %v1294_v13 }
 0x330   : > { %v1188_v20 = vadd.f32 %v1184_v3, %v1180_v0 }
 0x332   : > { %v1192_v59 = vadd.f32 %v1188_v20, %v2070_v44  ;;  %1255 = sbr.rel (!%p1656_p5) target bundleno = 831 (0x33f), region = 90 }
 0x334   : > { %v1244_v60 = vadd.f32 %v1240_v4, %v1192_v59 }
 0x335   : > { %v1296_v16 = vld [vmem:[%s2151_s26 + $0x10] sm:$0xff] (%p1656_p5) }
 0x336   : > { %1248 = vst [vmem:[%s2151_s26 + $0x18] sm:$0xff] %v1244_v60 }
 0x337   : > { %1297 = vst [vmem:[%s1257_s13 + $0x20] sm:$0xff] %v1296_v16 }
 0x33d   : > { %v1298_v44 = vld [vmem:[%s2151_s26 + $0x18] sm:$0xff] }
 0x33e   : > { %1299 = vst [vmem:[%s1257_s13 + $0x30] sm:$0xff] %v1298_v44 }
 0x33f PF: > { %p14_p11 = scmp.ge.s32.totalorder %s1644_s28, 4   ;;  %s2198_s24 = smov %s1575_s25 }
 0x340   : > { %s2199_s25 = smov %s1654_s8  ;;  %s2200_s26 = smov %s1644_s28 }
 0x341   :  { %16 = sbr.rel (!%p14_p11) target bundleno = 2 (0x2), region = 172 }

</bundles_post_ra>
